<compile_context>
chip_gen: v5e
topology: v5e:2x2
jax: 0.10.0
libtpu: 0.0.40
codegen_flags: <defaults>
</compile_context>

<pallas_src>
import functools
import math

import jax
import jax.numpy as jnp
from jax import lax
from jax.experimental import pallas as pl
from jax.experimental.pallas import tpu as pltpu


# MXU operand dtype (bf16 inputs, f32 accumulation via preferred_element_type).
MATMUL_DTYPE = jnp.bfloat16
# Stored weight-matrix dtype: halves weight HBM traffic / VMEM residency.
WEIGHT_DTYPE = jnp.bfloat16
# Explicit VMEM budget: above the 16/32 MiB scoped defaults (v5e / v6e-v7x),
# below v7x's 64 MiB-per-TensorCore physical cap.
VMEM_LIMIT_BYTES = 48 * 1024 * 1024


# ----------------------------- in-kernel helpers --------------------------- #

def _mm(a, b):
    """MXU matmul: bf16 operands, f32 accumulation."""
    return jnp.dot(a.astype(MATMUL_DTYPE), b.astype(MATMUL_DTYPE),
                   preferred_element_type=jnp.float32)


def _gelu(x):
    # TODO(synk): HF BERT uses erf-GELU; tanh-approx GELU used here (EUP tanh),
    # difference is negligible for these synthetic weights.
    c = math.sqrt(2.0 / math.pi)
    return 0.5 * x * (1.0 + jnp.tanh(c * (x + 0.044715 * x * x * x)))


def _layernorm(x, g, b, eps):
    mean = jnp.mean(x, axis=-1, keepdims=True)
    var = jnp.mean((x - mean) * (x - mean), axis=-1, keepdims=True)
    return (x - mean) * lax.rsqrt(var + eps) * g + b


# --------------------- BlockSpec helpers (+ Buffered probe) ---------------- #

@functools.lru_cache(maxsize=None)
def _buffered_kw():
    """Probe whether this JAX build honors pipeline_mode=pl.Buffered(1) on a
    pallas_call input BlockSpec. Grid-invariant weights don't need double
    buffering; single-buffering them halves their VMEM footprint (key headroom
    on v7x's 64 MiB/TC). Falls back to default specs if unsupported."""
    def _probe(x_ref, o_ref):
        o_ref[...] = x_ref[...] * 2.0
    try:
        kw = dict(pipeline_mode=pl.Buffered(1))
        out = pl.pallas_call(
            _probe,
            out_shape=jax.ShapeDtypeStruct((16, 128), jnp.float32),
            grid=(2,),
            in_specs=[pl.BlockSpec((8, 128), lambda i: (0, 0), **kw)],
            out_specs=pl.BlockSpec((8, 128), lambda i: (i, 0)),
        )(jnp.ones((8, 128), jnp.float32))
        jax.block_until_ready(out)
        return kw
    except Exception:
        return dict()


def _const_idx(nd):
    return lambda i, _nd=nd: (0,) * _nd


def _const_spec(shape):
    """Full-array block with a constant block index across the (1-D) grid, so
    the pipeline skips re-DMA of the same block between consecutive steps."""
    return pl.BlockSpec(shape, _const_idx(len(shape)))


def _weight_spec(shape):
    """Constant block, single-buffered when supported."""
    return pl.BlockSpec(shape, _const_idx(len(shape)), **_buffered_kw())


# ----------------------------- Pallas kernels ------------------------------ #

def encoder_layer_kernel(*refs, num_heads, head_dim, eps, fuse_input_ln):
    """One full BERT encoder layer for one batch element (S, H) block.

    Fuses: [optional embedding LayerNorm] + QKV matmul + multi-head attention
    + O-projection + residual + LN1 + FFN (GELU) + residual + LN2.
    Everything stays in VMEM.
    """
    if fuse_input_ln:
        (h_ref, mask_ref, gin_ref, bin_ref,
         wqkv_ref, bqkv_ref, wo_ref, bo_ref,
         g1_ref, be1_ref, w1_ref, bf1_ref, w2_ref, bf2_ref,
         g2_ref, be2_ref, o_ref, ctx_scr) = refs
    else:
        (h_ref, mask_ref,
         wqkv_ref, bqkv_ref, wo_ref, bo_ref,
         g1_ref, be1_ref, w1_ref, bf1_ref, w2_ref, bf2_ref,
         g2_ref, be2_ref, o_ref, ctx_scr) = refs

    H = num_heads * head_dim
    x = h_ref[...].astype(jnp.float32)                       # (S, H)
    scale = 1.0 / math.sqrt(head_dim)

    if fuse_input_ln:
        # Embedding LayerNorm fused as layer-0 prologue (saves an HBM trip).
        x = _layernorm(x, gin_ref[...], bin_ref[...], eps)

    # additive mask bias shared across heads/query rows: (1, S)
    bias = (1.0 - mask_ref[0].astype(jnp.float32)) * -10000.0

    # --- fused QKV projection: one MXU pass over (S,H)@(H,3H) ---
    qkv = _mm(x, wqkv_ref[...]) + bqkv_ref[...]              # (S, 3H) f32

    # --- per-head attention; each head's context lands in its lane slice of
    #     the (S, H) VMEM scratch so the output projection is ONE full-K matmul.
    # TODO(synk): at production sizes (S=512, H=768) convert to
    # lax.fori_loop(unroll=True) with pl.ds/pl.multiple_of head offsets,
    # flash-style KV-block tiling, and an FFN intermediate-dim accumulator.
    for hh in range(num_heads):
        lo = hh * head_dim
        q = qkv[:, lo:lo + head_dim]                         # (S, hd)
        k = qkv[:, H + lo:H + lo + head_dim]                 # (S, hd)
        v = qkv[:, 2 * H + lo:2 * H + lo + head_dim]         # (S, hd)
        # q @ k^T without materializing a transposed K
        s = lax.dot_general(q.astype(MATMUL_DTYPE), k.astype(MATMUL_DTYPE),
                            (((1,), (1,)), ((), ())),
                            preferred_element_type=jnp.float32) * scale
        s = s + bias                                         # (S, S)
        m = jnp.max(s, axis=-1, keepdims=True)
        p = jnp.exp(s - m)
        # EUP approx reciprocal for the softmax denominator (free slot);
        # small relative error vs exact division (fine for this tolerance).
        p = p * pl.reciprocal(jnp.sum(p, axis=-1, keepdims=True), approx=True)
        ctx_scr[:, lo:lo + head_dim] = _mm(p, v)             # (S, hd)

    # --- single full-K output projection over all heads ---
    attn = _mm(ctx_scr[...], wo_ref[...]) + bo_ref[...]      # (S, H)

    # --- residual + LayerNorm 1 ---
    h1 = _layernorm(attn + x, g1_ref[...], be1_ref[...], eps)

    # --- fused FFN: GELU(h1@W1+b1)@W2+b2, intermediate never leaves VMEM ---
    ff = _gelu(_mm(h1, w1_ref[...]) + bf1_ref[...])          # (S, I)
    ff = _mm(ff, w2_ref[...]) + bf2_ref[...]                 # (S, H)

    # --- residual + LayerNorm 2 ---
    o_ref[...] = _layernorm(ff + h1, g2_ref[...], be2_ref[...], eps).astype(o_ref.dtype)


def dense_kernel(x_ref, w_ref, b_ref, o_ref, *, act):
    """y = act(x @ W + b). Only used for the tiny pooler head."""
    y = _mm(x_ref[...], w_ref[...]) + b_ref[...]
    if act == "gelu":
        y = _gelu(y)
    elif act == "tanh":
        y = jnp.tanh(y)
    o_ref[...] = y.astype(o_ref.dtype)


# ------------------------------ JAX wrappers ------------------------------- #

def encoder_layer(h, mask_f, lp, *, num_heads, head_dim, eps=1e-12, input_ln=None):
    """h: (B*S, H) f32; mask_f: (B, 1, S) f32 raw {0,1} mask.
    input_ln: optional (gamma, beta) to apply as an in-kernel prologue LayerNorm."""
    M, H = h.shape
    B = mask_f.shape[0]
    S = M // B
    I = lp["ff1_w"].shape[1]

    row_spec = pl.BlockSpec((S, H), lambda b: (b, 0))
    mask_spec = pl.BlockSpec((1, 1, S), lambda b: (b, 0, 0))

    args = [h, mask_f]
    specs = [row_spec, mask_spec]
    if input_ln is not None:
        gin, bin_ = input_ln
        args += [gin, bin_]
        specs += [_weight_spec((1, H)), _weight_spec((1, H))]
    args += [lp["qkv_w"], lp["qkv_b"], lp["o_w"], lp["o_b"],
             lp["ln1_g"], lp["ln1_b"], lp["ff1_w"], lp["ff1_b"],
             lp["ff2_w"], lp["ff2_b"], lp["ln2_g"], lp["ln2_b"]]
    specs += [_weight_spec((H, 3 * H)), _weight_spec((1, 3 * H)),
              _weight_spec((H, H)), _weight_spec((1, H)),
              _weight_spec((1, H)), _weight_spec((1, H)),
              _weight_spec((H, I)), _weight_spec((1, I)),
              _weight_spec((I, H)), _weight_spec((1, H)),
              _weight_spec((1, H)), _weight_spec((1, H))]

    return pl.pallas_call(
        functools.partial(encoder_layer_kernel,
                          num_heads=num_heads, head_dim=head_dim, eps=eps,
                          fuse_input_ln=input_ln is not None),
        out_shape=jax.ShapeDtypeStruct((M, H), h.dtype),
        grid=(B,),
        in_specs=specs,
        out_specs=row_spec,
        scratch_shapes=[pltpu.VMEM((S, H), jnp.float32)],   # per-head context slab
        compiler_params=pltpu.CompilerParams(
            dimension_semantics=("parallel",),               # v7x: shard batch over 2 TCs
            vmem_limit_bytes=VMEM_LIMIT_BYTES),
    )(*args)


def dense(x, w, b, act="none"):
    # Pooler (B, H)@(H, H): far below one vreg tile, so a single full block.
    M, K = x.shape
    N = w.shape[1]
    return pl.pallas_call(
        functools.partial(dense_kernel, act=act),
        out_shape=jax.ShapeDtypeStruct((M, N), x.dtype),
        grid=(1,),
        in_specs=[_const_spec((M, K)), _const_spec((K, N)), _const_spec((1, N))],
        out_specs=_const_spec((M, N)),
    )(x, w, b)


# --------------------------- Model (synthetic BERT) ------------------------ #

class Config:
    vocab_size = 100
    hidden = 32
    num_heads = 4
    head_dim = 8          # hidden // num_heads
    intermediate = 64
    num_layers = 2
    max_pos = 16
    type_vocab = 2


def init_params(key, cfg):
    std = 0.02
    ks = iter(jax.random.split(key, 64))
    H, I = cfg.hidden, cfg.intermediate

    def nrm(shape, dtype=WEIGHT_DTYPE):
        return (std * jax.random.normal(next(ks), shape)).astype(dtype)

    p = {
        "word_emb": nrm((cfg.vocab_size, H), jnp.float32),
        "pos_emb": nrm((cfg.max_pos, H), jnp.float32),
        "type_emb": nrm((cfg.type_vocab, H), jnp.float32),
        "emb_ln_g": jnp.ones((1, H), jnp.float32),
        "emb_ln_b": jnp.zeros((1, H), jnp.float32),
        "layers": [],
        "pool_w": nrm((H, H)),
        "pool_b": nrm((1, H), jnp.float32),
    }
    for _ in range(cfg.num_layers):
        # Q/K/V weights generated separately (matching the PyTorch module's three
        # Linear layers) but stored FUSED (H, 3H) at init -> no per-forward
        # concatenate / extra HBM weight copy in the traced graph.
        q_w, k_w, v_w = nrm((H, H)), nrm((H, H)), nrm((H, H))
        lp = {
            "qkv_w": jnp.concatenate([q_w, k_w, v_w], axis=1),     # (H, 3H) bf16
            "qkv_b": nrm((1, 3 * H), jnp.float32),
            "o_w": nrm((H, H)), "o_b": nrm((1, H), jnp.float32),
            "ln1_g": jnp.ones((1, H), jnp.float32),
            "ln1_b": jnp.zeros((1, H), jnp.float32),
            "ff1_w": nrm((H, I)), "ff1_b": nrm((1, I), jnp.float32),
            "ff2_w": nrm((I, H)), "ff2_b": nrm((1, H), jnp.float32),
            "ln2_g": jnp.ones((1, H), jnp.float32),
            "ln2_b": jnp.zeros((1, H), jnp.float32),
        }
        p["layers"].append(lp)
    return p


def transformer_encoder_forward(params, input_ids, attention_mask, token_type_ids, cfg):
    B, S = input_ids.shape
    H = cfg.hidden
    M = B * S

    # --- embeddings (gather is glue; the embedding LayerNorm is fused into
    #     the first encoder-layer kernel). ---
    # TODO(synk): embedding-table gathers stay in JAX (jnp.take); a DMA-gather
    # kernel is not worthwhile at this size.
    positions = jnp.broadcast_to(jnp.arange(S), (B, S))
    emb = (jnp.take(params["word_emb"], input_ids, axis=0)
           + jnp.take(params["pos_emb"], positions, axis=0)
           + jnp.take(params["type_emb"], token_type_ids, axis=0))      # (B,S,H)
    h = emb.reshape(M, H).astype(jnp.float32)

    # raw {0,1} mask, (B,1,S); the -10000 bias is built inside the kernel
    mask_f = attention_mask.astype(jnp.float32).reshape(B, 1, S)

    for li, lp in enumerate(params["layers"]):
        input_ln = (params["emb_ln_g"], params["emb_ln_b"]) if li == 0 else None
        h = encoder_layer(h, mask_f, lp, num_heads=cfg.num_heads,
                          head_dim=cfg.head_dim, input_ln=input_ln)

    # --- pooler: tanh(Linear(h[:, 0, :])) -> (B, H) == 'pooler_output' ---
    first_tok = h.reshape(B, S, H)[:, 0, :]
    pooled = dense(first_tok, params["pool_w"], params["pool_b"], act="tanh")
    return pooled


# --------------------------- pure-JAX reference ---------------------------- #

def reference_forward(params, input_ids, attention_mask, token_type_ids, cfg):
    B, S = input_ids.shape
    H = cfg.hidden

    def ln(x, g, b, eps=1e-12):
        mu = jnp.mean(x, axis=-1, keepdims=True)
        var = jnp.mean((x - mu) ** 2, axis=-1, keepdims=True)
        return (x - mu) * lax.rsqrt(var + eps) * g + b

    positions = jnp.broadcast_to(jnp.arange(S), (B, S))
    h = (jnp.take(params["word_emb"], input_ids, axis=0)
         + jnp.take(params["pos_emb"], positions, axis=0)
         + jnp.take(params["type_emb"], token_type_ids, axis=0)).astype(jnp.float32)
    h = ln(h, params["emb_ln_g"], params["emb_ln_b"])

    bias = (1.0 - attention_mask.astype(jnp.float32))[:, None, None, :] * -10000.0

    for lp in params["layers"]:
        qkv = h @ lp["qkv_w"].astype(jnp.float32) + lp["qkv_b"]
        q, k, v = jnp.split(qkv, 3, axis=-1)

        def heads(t):
            return t.reshape(B, S, cfg.num_heads, cfg.head_dim).transpose(0, 2, 1, 3)

        q, k, v = heads(q), heads(k), heads(v)
        s = jnp.einsum("bhqd,bhkd->bhqk", q, k) / math.sqrt(cfg.head_dim) + bias
        p = jax.nn.softmax(s, axis=-1)
        ctx = jnp.einsum("bhqk,bhkd->bhqd", p, v).transpose(0, 2, 1, 3).reshape(B, S, H)
        attn = ctx @ lp["o_w"].astype(jnp.float32) + lp["o_b"]
        h1 = ln(attn + h, lp["ln1_g"], lp["ln1_b"])
        ff = _gelu(h1 @ lp["ff1_w"].astype(jnp.float32) + lp["ff1_b"])
        ff = ff @ lp["ff2_w"].astype(jnp.float32) + lp["ff2_b"]
        h = ln(ff + h1, lp["ln2_g"], lp["ln2_b"])

    return jnp.tanh(h[:, 0, :] @ params["pool_w"].astype(jnp.float32) + params["pool_b"])


# ---------------------------------- main ----------------------------------- #

if __name__ == "__main__":
    cfg = Config()
    B, S = 2, 8

    key = jax.random.PRNGKey(0)
    k_param, k_ids = jax.random.split(key, 2)

    params = init_params(k_param, cfg)

    input_ids = jax.random.randint(k_ids, (B, S), 0, cfg.vocab_size, dtype=jnp.int32)
    token_type_ids = jnp.zeros((B, S), dtype=jnp.int32)
    # second example has two padding positions at the end
    attention_mask = jnp.array([[1] * S, [1] * (S - 2) + [0, 0]], dtype=jnp.int32)

    out = transformer_encoder_forward(params, input_ids, attention_mask,
                                      token_type_ids, cfg)
    out = jax.block_until_ready(out)
    assert out.shape == (B, cfg.hidden), out.shape
    assert bool(jnp.all(jnp.isfinite(out)))

    # parity check vs pure-JAX reference (loose tol: bf16 MXU + approx recip)
    ref = reference_forward(params, input_ids, attention_mask, token_type_ids, cfg)
    max_err = float(jnp.max(jnp.abs(out.astype(jnp.float32) - ref)))
    assert max_err < 3e-2, f"kernel vs reference mismatch: {max_err}"

    print("KERNEL_OK")
</pallas_src>

<mosaic_0001>
module attributes {stable_mosaic.version = 11 : i64} {
  func.func @_probe(%arg0: i32, %arg1: memref<8x128xf32, #tpu.memory_space<vmem>>, %arg2: memref<8x128xf32, #tpu.memory_space<vmem>>) attributes {dimension_semantics = [#tpu.dimension_semantics<arbitrary>], iteration_bounds = array<i64: 2>, scalar_prefetch = 0 : i64, scratch_operands = 0 : i64, tpu.core_type = #tpu.core_type<tc>, window_params = [{pipeline_mode = #tpu.pipeline_mode<synchronous>, transform_indices = @transform_0, window_bounds = array<i64: 8, 128>}, {transform_indices = @transform_1, window_bounds = array<i64: 8, 128>}]} {
    %c0 = arith.constant 0 : index
    %c0_0 = arith.constant 0 : index
    %0 = vector.load %arg1[%c0, %c0_0] : memref<8x128xf32, #tpu.memory_space<vmem>>, vector<8x128xf32>
    %cst = arith.constant 2.000000e+00 : f32
    %1 = vector.broadcast %cst : f32 to vector<8x128xf32>
    %2 = arith.mulf %0, %1 : vector<8x128xf32>
    %c0_1 = arith.constant 0 : index
    %c0_2 = arith.constant 0 : index
    %3 = vector.load %arg2[%c0_1, %c0_2] : memref<8x128xf32, #tpu.memory_space<vmem>>, vector<8x128xf32>
    tpu.vector_store %arg2[%c0_1, %c0_2], %2 {strides = array<i32>} : memref<8x128xf32, #tpu.memory_space<vmem>>, vector<8x128xf32>,
    return
  }
  func.func @transform_0(%arg0: i32) -> (i32, i32) {
    %c0_i32 = arith.constant 0 : i32
    %c0_i32_0 = arith.constant 0 : i32
    %c0_i32_1 = arith.constant 0 : i32
    return %c0_i32, %c0_i32_0 : i32, i32
  }
  func.func @transform_1(%arg0: i32) -> (i32, i32) {
    %c0_i32 = arith.constant 0 : i32
    %c0_i32_0 = arith.constant 0 : i32
    return %arg0, %c0_i32 : i32, i32
  }
}

module attributes {stable_mosaic.version = 11 : i64} {
  func.func @encoder_layer_kernel(%arg0: i32, %arg1: memref<8x32xf32, #tpu.memory_space<vmem>>, %arg2: memref<1x1x8xf32, #tpu.memory_space<vmem>>, %arg3: memref<1x32xf32, #tpu.memory_space<vmem>>, %arg4: memref<1x32xf32, #tpu.memory_space<vmem>>, %arg5: memref<32x96xbf16, #tpu.memory_space<vmem>>, %arg6: memref<1x96xf32, #tpu.memory_space<vmem>>, %arg7: memref<32x32xbf16, #tpu.memory_space<vmem>>, %arg8: memref<1x32xf32, #tpu.memory_space<vmem>>, %arg9: memref<1x32xf32, #tpu.memory_space<vmem>>, %arg10: memref<1x32xf32, #tpu.memory_space<vmem>>, %arg11: memref<32x64xbf16, #tpu.memory_space<vmem>>, %arg12: memref<1x64xf32, #tpu.memory_space<vmem>>, %arg13: memref<64x32xbf16, #tpu.memory_space<vmem>>, %arg14: memref<1x32xf32, #tpu.memory_space<vmem>>, %arg15: memref<1x32xf32, #tpu.memory_space<vmem>>, %arg16: memref<1x32xf32, #tpu.memory_space<vmem>>, %arg17: memref<8x32xf32, #tpu.memory_space<vmem>>, %arg18: memref<8x32xf32, #tpu.memory_space<vmem>>) attributes {dimension_semantics = [#tpu.dimension_semantics<parallel>], iteration_bounds = array<i64: 2>, scalar_prefetch = 0 : i64, scratch_operands = 1 : i64, tpu.core_type = #tpu.core_type<tc>, window_params = [{transform_indices = @transform_0, window_bounds = array<i64: 8, 32>}, {transform_indices = @transform_1, window_bounds = array<i64: 1, 1, 8>}, {pipeline_mode = #tpu.pipeline_mode<synchronous>, transform_indices = @transform_2, window_bounds = array<i64: 1, 32>}, {pipeline_mode = #tpu.pipeline_mode<synchronous>, transform_indices = @transform_3, window_bounds = array<i64: 1, 32>}, {pipeline_mode = #tpu.pipeline_mode<synchronous>, transform_indices = @transform_4, window_bounds = array<i64: 32, 96>}, {pipeline_mode = #tpu.pipeline_mode<synchronous>, transform_indices = @transform_5, window_bounds = array<i64: 1, 96>}, {pipeline_mode = #tpu.pipeline_mode<synchronous>, transform_indices = @transform_6, window_bounds = array<i64: 32, 32>}, {pipeline_mode = #tpu.pipeline_mode<synchronous>, transform_indices = @transform_7, window_bounds = array<i64: 1, 32>}, {pipeline_mode = #tpu.pipeline_mode<synchronous>, transform_indices = @transform_8, window_bounds = array<i64: 1, 32>}, {pipeline_mode = #tpu.pipeline_mode<synchronous>, transform_indices = @transform_9, window_bounds = array<i64: 1, 32>}, {pipeline_mode = #tpu.pipeline_mode<synchronous>, transform_indices = @transform_10, window_bounds = array<i64: 32, 64>}, {pipeline_mode = #tpu.pipeline_mode<synchronous>, transform_indices = @transform_11, window_bounds = array<i64: 1, 64>}, {pipeline_mode = #tpu.pipeline_mode<synchronous>, transform_indices = @transform_12, window_bounds = array<i64: 64, 32>}, {pipeline_mode = #tpu.pipeline_mode<synchronous>, transform_indices = @transform_13, window_bounds = array<i64: 1, 32>}, {pipeline_mode = #tpu.pipeline_mode<synchronous>, transform_indices = @transform_14, window_bounds = array<i64: 1, 32>}, {pipeline_mode = #tpu.pipeline_mode<synchronous>, transform_indices = @transform_15, window_bounds = array<i64: 1, 32>}, {transform_indices = @transform_16, window_bounds = array<i64: 8, 32>}]} {
    %c0 = arith.constant 0 : index
    %c0_0 = arith.constant 0 : index
    %0 = vector.load %arg1[%c0, %c0_0] : memref<8x32xf32, #tpu.memory_space<vmem>>, vector<8x32xf32>
    %c0_1 = arith.constant 0 : index
    %c0_2 = arith.constant 0 : index
    %1 = vector.load %arg3[%c0_1, %c0_2] : memref<1x32xf32, #tpu.memory_space<vmem>>, vector<1x32xf32>
    %c0_3 = arith.constant 0 : index
    %c0_4 = arith.constant 0 : index
    %2 = vector.load %arg4[%c0_3, %c0_4] : memref<1x32xf32, #tpu.memory_space<vmem>>, vector<1x32xf32>
    %cst = arith.constant dense<0.000000e+00> : vector<8xf32>
    %3 = vector.multi_reduction <add>, %0, %cst [1] : vector<8x32xf32> to vector<8xf32>
    %4 = vector.shape_cast %3 : vector<8xf32> to vector<8x1xf32>
    %cst_5 = arith.constant 3.200000e+01 : f32
    %5 = vector.broadcast %cst_5 : f32 to vector<8x1xf32>
    %6 = arith.divf %4, %5 : vector<8x1xf32>
    %7 = vector.broadcast %6 : vector<8x1xf32> to vector<8x32xf32>
    %8 = arith.subf %0, %7 : vector<8x32xf32>
    %9 = vector.broadcast %6 : vector<8x1xf32> to vector<8x32xf32>
    %10 = arith.subf %0, %9 : vector<8x32xf32>
    %11 = arith.mulf %8, %10 : vector<8x32xf32>
    %cst_6 = arith.constant dense<0.000000e+00> : vector<8xf32>
    %12 = vector.multi_reduction <add>, %11, %cst_6 [1] : vector<8x32xf32> to vector<8xf32>
    %13 = vector.shape_cast %12 : vector<8xf32> to vector<8x1xf32>
    %cst_7 = arith.constant 3.200000e+01 : f32
    %14 = vector.broadcast %cst_7 : f32 to vector<8x1xf32>
    %15 = arith.divf %13, %14 : vector<8x1xf32>
    %16 = vector.broadcast %6 : vector<8x1xf32> to vector<8x32xf32>
    %17 = arith.subf %0, %16 : vector<8x32xf32>
    %cst_8 = arith.constant 9.99999996E-13 : f32
    %18 = vector.broadcast %cst_8 : f32 to vector<8x1xf32>
    %19 = arith.addf %15, %18 : vector<8x1xf32>
    %20 = math.rsqrt %19 : vector<8x1xf32>
    %21 = vector.broadcast %20 : vector<8x1xf32> to vector<8x32xf32>
    %22 = arith.mulf %17, %21 : vector<8x32xf32>
    %23 = vector.broadcast %1 : vector<1x32xf32> to vector<8x32xf32>
    %24 = arith.mulf %22, %23 : vector<8x32xf32>
    %25 = vector.broadcast %2 : vector<1x32xf32> to vector<8x32xf32>
    %26 = arith.addf %24, %25 : vector<8x32xf32>
    %c0_9 = arith.constant 0 : index
    %c0_10 = arith.constant 0 : index
    %c0_11 = arith.constant 0 : index
    %27 = vector.load %arg2[%c0_9, %c0_10, %c0_11] : memref<1x1x8xf32, #tpu.memory_space<vmem>>, vector<1x1x8xf32>
    %28 = vector.shape_cast %27 : vector<1x1x8xf32> to vector<1x8xf32>
    %cst_12 = arith.constant 1.000000e+00 : f32
    %29 = vector.broadcast %cst_12 : f32 to vector<1x8xf32>
    %30 = arith.subf %29, %28 : vector<1x8xf32>
    %cst_13 = arith.constant -1.000000e+04 : f32
    %31 = vector.broadcast %cst_13 : f32 to vector<1x8xf32>
    %32 = arith.mulf %30, %31 : vector<1x8xf32>
    %c0_14 = arith.constant 0 : index
    %c0_15 = arith.constant 0 : index
    %33 = vector.load %arg5[%c0_14, %c0_15] : memref<32x96xbf16, #tpu.memory_space<vmem>>, vector<32x96xbf16>
    %34 = arith.truncf %26 : vector<8x32xf32> to vector<8x32xbf16>
    %cst_16 = arith.constant dense<0.000000e+00> : vector<8x96xf32>
    %35 = tpu.matmul %34, %33, %cst_16 {dimension_numbers = #tpu.dot_dimension_numbers<[1], [0], [0], [1], [0, 0, 1, 1], [], []>} : vector<8x32xbf16>, vector<32x96xbf16>, vector<8x96xf32> -> vector<8x96xf32>
    %c0_17 = arith.constant 0 : index
    %c0_18 = arith.constant 0 : index
    %36 = vector.load %arg6[%c0_17, %c0_18] : memref<1x96xf32, #tpu.memory_space<vmem>>, vector<1x96xf32>
    %37 = vector.broadcast %36 : vector<1x96xf32> to vector<8x96xf32>
    %38 = arith.addf %35, %37 : vector<8x96xf32>
    %39 = vector.extract_strided_slice %38 {offsets = [0, 0], sizes = [8, 8], strides = [1, 1]} : vector<8x96xf32> to vector<8x8xf32>
    %40 = vector.extract_strided_slice %38 {offsets = [0, 32], sizes = [8, 8], strides = [1, 1]} : vector<8x96xf32> to vector<8x8xf32>
    %41 = vector.extract_strided_slice %38 {offsets = [0, 64], sizes = [8, 8], strides = [1, 1]} : vector<8x96xf32> to vector<8x8xf32>
    %42 = arith.truncf %39 : vector<8x8xf32> to vector<8x8xbf16>
    %43 = arith.truncf %40 : vector<8x8xf32> to vector<8x8xbf16>
    %cst_19 = arith.constant dense<0.000000e+00> : vector<8x8xf32>
    %44 = tpu.matmul %42, %43, %cst_19 {dimension_numbers = #tpu.dot_dimension_numbers<[1], [1], [0], [0], [0, 0, 1, 0], [], []>} : vector<8x8xbf16>, vector<8x8xbf16>, vector<8x8xf32> -> vector<8x8xf32>
    %cst_20 = arith.constant 0.353553385 : f32
    %45 = vector.broadcast %cst_20 : f32 to vector<8x8xf32>
    %46 = arith.mulf %44, %45 : vector<8x8xf32>
    %47 = vector.broadcast %32 : vector<1x8xf32> to vector<8x8xf32>
    %48 = arith.addf %46, %47 : vector<8x8xf32>
    %cst_21 = arith.constant dense<0xFF800000> : vector<8xf32>
    %49 = vector.multi_reduction <maximumf>, %48, %cst_21 [1] : vector<8x8xf32> to vector<8xf32>
    %50 = vector.shape_cast %49 : vector<8xf32> to vector<8x1xf32>
    %51 = vector.broadcast %50 : vector<8x1xf32> to vector<8x8xf32>
    %52 = arith.subf %48, %51 : vector<8x8xf32>
    %53 = math.exp %52 : vector<8x8xf32>
    %cst_22 = arith.constant dense<0.000000e+00> : vector<8xf32>
    %54 = vector.multi_reduction <add>, %53, %cst_22 [1] : vector<8x8xf32> to vector<8xf32>
    %55 = vector.shape_cast %54 : vector<8xf32> to vector<8x1xf32>
    %56 = tpu.reciprocal %55 {approx = true} : vector<8x1xf32> -> vector<8x1xf32>
    %57 = vector.broadcast %56 : vector<8x1xf32> to vector<8x8xf32>
    %58 = arith.mulf %53, %57 : vector<8x8xf32>
    %59 = arith.truncf %58 : vector<8x8xf32> to vector<8x8xbf16>
    %60 = arith.truncf %41 : vector<8x8xf32> to vector<8x8xbf16>
    %cst_23 = arith.constant dense<0.000000e+00> : vector<8x8xf32>
    %61 = tpu.matmul %59, %60, %cst_23 {dimension_numbers = #tpu.dot_dimension_numbers<[1], [0], [0], [1], [0, 0, 1, 1], [], []>} : vector<8x8xbf16>, vector<8x8xbf16>, vector<8x8xf32> -> vector<8x8xf32>
    %c0_24 = arith.constant 0 : index
    %c0_25 = arith.constant 0 : index
    %62 = vector.load %arg18[%c0_24, %c0_25] : memref<8x32xf32, #tpu.memory_space<vmem>>, vector<8x8xf32>
    tpu.vector_store %arg18[%c0_24, %c0_25], %61 {strides = array<i32>} : memref<8x32xf32, #tpu.memory_space<vmem>>, vector<8x8xf32>,
    %63 = vector.extract_strided_slice %38 {offsets = [0, 8], sizes = [8, 8], strides = [1, 1]} : vector<8x96xf32> to vector<8x8xf32>
    %64 = vector.extract_strided_slice %38 {offsets = [0, 40], sizes = [8, 8], strides = [1, 1]} : vector<8x96xf32> to vector<8x8xf32>
    %65 = vector.extract_strided_slice %38 {offsets = [0, 72], sizes = [8, 8], strides = [1, 1]} : vector<8x96xf32> to vector<8x8xf32>
    %66 = arith.truncf %63 : vector<8x8xf32> to vector<8x8xbf16>
    %67 = arith.truncf %64 : vector<8x8xf32> to vector<8x8xbf16>
    %cst_26 = arith.constant dense<0.000000e+00> : vector<8x8xf32>
    %68 = tpu.matmul %66, %67, %cst_26 {dimension_numbers = #tpu.dot_dimension_numbers<[1], [1], [0], [0], [0, 0, 1, 0], [], []>} : vector<8x8xbf16>, vector<8x8xbf16>, vector<8x8xf32> -> vector<8x8xf32>
    %cst_27 = arith.constant 0.353553385 : f32
    %69 = vector.broadcast %cst_27 : f32 to vector<8x8xf32>
    %70 = arith.mulf %68, %69 : vector<8x8xf32>
    %71 = vector.broadcast %32 : vector<1x8xf32> to vector<8x8xf32>
    %72 = arith.addf %70, %71 : vector<8x8xf32>
    %cst_28 = arith.constant dense<0xFF800000> : vector<8xf32>
    %73 = vector.multi_reduction <maximumf>, %72, %cst_28 [1] : vector<8x8xf32> to vector<8xf32>
    %74 = vector.shape_cast %73 : vector<8xf32> to vector<8x1xf32>
    %75 = vector.broadcast %74 : vector<8x1xf32> to vector<8x8xf32>
    %76 = arith.subf %72, %75 : vector<8x8xf32>
    %77 = math.exp %76 : vector<8x8xf32>
    %cst_29 = arith.constant dense<0.000000e+00> : vector<8xf32>
    %78 = vector.multi_reduction <add>, %77, %cst_29 [1] : vector<8x8xf32> to vector<8xf32>
    %79 = vector.shape_cast %78 : vector<8xf32> to vector<8x1xf32>
    %80 = tpu.reciprocal %79 {approx = true} : vector<8x1xf32> -> vector<8x1xf32>
    %81 = vector.broadcast %80 : vector<8x1xf32> to vector<8x8xf32>
    %82 = arith.mulf %77, %81 : vector<8x8xf32>
    %83 = arith.truncf %82 : vector<8x8xf32> to vector<8x8xbf16>
    %84 = arith.truncf %65 : vector<8x8xf32> to vector<8x8xbf16>
    %cst_30 = arith.constant dense<0.000000e+00> : vector<8x8xf32>
    %85 = tpu.matmul %83, %84, %cst_30 {dimension_numbers = #tpu.dot_dimension_numbers<[1], [0], [0], [1], [0, 0, 1, 1], [], []>} : vector<8x8xbf16>, vector<8x8xbf16>, vector<8x8xf32> -> vector<8x8xf32>
    %c0_31 = arith.constant 0 : index
    %c8 = arith.constant 8 : index
    %86 = vector.load %arg18[%c0_31, %c8] : memref<8x32xf32, #tpu.memory_space<vmem>>, vector<8x8xf32>
    tpu.vector_store %arg18[%c0_31, %c8], %85 {strides = array<i32>} : memref<8x32xf32, #tpu.memory_space<vmem>>, vector<8x8xf32>,
    %87 = vector.extract_strided_slice %38 {offsets = [0, 16], sizes = [8, 8], strides = [1, 1]} : vector<8x96xf32> to vector<8x8xf32>
    %88 = vector.extract_strided_slice %38 {offsets = [0, 48], sizes = [8, 8], strides = [1, 1]} : vector<8x96xf32> to vector<8x8xf32>
    %89 = vector.extract_strided_slice %38 {offsets = [0, 80], sizes = [8, 8], strides = [1, 1]} : vector<8x96xf32> to vector<8x8xf32>
    %90 = arith.truncf %87 : vector<8x8xf32> to vector<8x8xbf16>
    %91 = arith.truncf %88 : vector<8x8xf32> to vector<8x8xbf16>
    %cst_32 = arith.constant dense<0.000000e+00> : vector<8x8xf32>
    %92 = tpu.matmul %90, %91, %cst_32 {dimension_numbers = #tpu.dot_dimension_numbers<[1], [1], [0], [0], [0, 0, 1, 0], [], []>} : vector<8x8xbf16>, vector<8x8xbf16>, vector<8x8xf32> -> vector<8x8xf32>
    %cst_33 = arith.constant 0.353553385 : f32
    %93 = vector.broadcast %cst_33 : f32 to vector<8x8xf32>
    %94 = arith.mulf %92, %93 : vector<8x8xf32>
    %95 = vector.broadcast %32 : vector<1x8xf32> to vector<8x8xf32>
    %96 = arith.addf %94, %95 : vector<8x8xf32>
    %cst_34 = arith.constant dense<0xFF800000> : vector<8xf32>
    %97 = vector.multi_reduction <maximumf>, %96, %cst_34 [1] : vector<8x8xf32> to vector<8xf32>
    %98 = vector.shape_cast %97 : vector<8xf32> to vector<8x1xf32>
    %99 = vector.broadcast %98 : vector<8x1xf32> to vector<8x8xf32>
    %100 = arith.subf %96, %99 : vector<8x8xf32>
    %101 = math.exp %100 : vector<8x8xf32>
    %cst_35 = arith.constant dense<0.000000e+00> : vector<8xf32>
    %102 = vector.multi_reduction <add>, %101, %cst_35 [1] : vector<8x8xf32> to vector<8xf32>
    %103 = vector.shape_cast %102 : vector<8xf32> to vector<8x1xf32>
    %104 = tpu.reciprocal %103 {approx = true} : vector<8x1xf32> -> vector<8x1xf32>
    %105 = vector.broadcast %104 : vector<8x1xf32> to vector<8x8xf32>
    %106 = arith.mulf %101, %105 : vector<8x8xf32>
    %107 = arith.truncf %106 : vector<8x8xf32> to vector<8x8xbf16>
    %108 = arith.truncf %89 : vector<8x8xf32> to vector<8x8xbf16>
    %cst_36 = arith.constant dense<0.000000e+00> : vector<8x8xf32>
    %109 = tpu.matmul %107, %108, %cst_36 {dimension_numbers = #tpu.dot_dimension_numbers<[1], [0], [0], [1], [0, 0, 1, 1], [], []>} : vector<8x8xbf16>, vector<8x8xbf16>, vector<8x8xf32> -> vector<8x8xf32>
    %c0_37 = arith.constant 0 : index
    %c16 = arith.constant 16 : index
    %110 = vector.load %arg18[%c0_37, %c16] : memref<8x32xf32, #tpu.memory_space<vmem>>, vector<8x8xf32>
    tpu.vector_store %arg18[%c0_37, %c16], %109 {strides = array<i32>} : memref<8x32xf32, #tpu.memory_space<vmem>>, vector<8x8xf32>,
    %111 = vector.extract_strided_slice %38 {offsets = [0, 24], sizes = [8, 8], strides = [1, 1]} : vector<8x96xf32> to vector<8x8xf32>
    %112 = vector.extract_strided_slice %38 {offsets = [0, 56], sizes = [8, 8], strides = [1, 1]} : vector<8x96xf32> to vector<8x8xf32>
    %113 = vector.extract_strided_slice %38 {offsets = [0, 88], sizes = [8, 8], strides = [1, 1]} : vector<8x96xf32> to vector<8x8xf32>
    %114 = arith.truncf %111 : vector<8x8xf32> to vector<8x8xbf16>
    %115 = arith.truncf %112 : vector<8x8xf32> to vector<8x8xbf16>
    %cst_38 = arith.constant dense<0.000000e+00> : vector<8x8xf32>
    %116 = tpu.matmul %114, %115, %cst_38 {dimension_numbers = #tpu.dot_dimension_numbers<[1], [1], [0], [0], [0, 0, 1, 0], [], []>} : vector<8x8xbf16>, vector<8x8xbf16>, vector<8x8xf32> -> vector<8x8xf32>
    %cst_39 = arith.constant 0.353553385 : f32
    %117 = vector.broadcast %cst_39 : f32 to vector<8x8xf32>
    %118 = arith.mulf %116, %117 : vector<8x8xf32>
    %119 = vector.broadcast %32 : vector<1x8xf32> to vector<8x8xf32>
    %120 = arith.addf %118, %119 : vector<8x8xf32>
    %cst_40 = arith.constant dense<0xFF800000> : vector<8xf32>
    %121 = vector.multi_reduction <maximumf>, %120, %cst_40 [1] : vector<8x8xf32> to vector<8xf32>
    %122 = vector.shape_cast %121 : vector<8xf32> to vector<8x1xf32>
    %123 = vector.broadcast %122 : vector<8x1xf32> to vector<8x8xf32>
    %124 = arith.subf %120, %123 : vector<8x8xf32>
    %125 = math.exp %124 : vector<8x8xf32>
    %cst_41 = arith.constant dense<0.000000e+00> : vector<8xf32>
    %126 = vector.multi_reduction <add>, %125, %cst_41 [1] : vector<8x8xf32> to vector<8xf32>
    %127 = vector.shape_cast %126 : vector<8xf32> to vector<8x1xf32>
    %128 = tpu.reciprocal %127 {approx = true} : vector<8x1xf32> -> vector<8x1xf32>
    %129 = vector.broadcast %128 : vector<8x1xf32> to vector<8x8xf32>
    %130 = arith.mulf %125, %129 : vector<8x8xf32>
    %131 = arith.truncf %130 : vector<8x8xf32> to vector<8x8xbf16>
    %132 = arith.truncf %113 : vector<8x8xf32> to vector<8x8xbf16>
    %cst_42 = arith.constant dense<0.000000e+00> : vector<8x8xf32>
    %133 = tpu.matmul %131, %132, %cst_42 {dimension_numbers = #tpu.dot_dimension_numbers<[1], [0], [0], [1], [0, 0, 1, 1], [], []>} : vector<8x8xbf16>, vector<8x8xbf16>, vector<8x8xf32> -> vector<8x8xf32>
    %c0_43 = arith.constant 0 : index
    %c24 = arith.constant 24 : index
    %134 = vector.load %arg18[%c0_43, %c24] : memref<8x32xf32, #tpu.memory_space<vmem>>, vector<8x8xf32>
    tpu.vector_store %arg18[%c0_43, %c24], %133 {strides = array<i32>} : memref<8x32xf32, #tpu.memory_space<vmem>>, vector<8x8xf32>,
    %c0_44 = arith.constant 0 : index
    %c0_45 = arith.constant 0 : index
    %135 = vector.load %arg18[%c0_44, %c0_45] : memref<8x32xf32, #tpu.memory_space<vmem>>, vector<8x32xf32>
    %c0_46 = arith.constant 0 : index
    %c0_47 = arith.constant 0 : index
    %136 = vector.load %arg7[%c0_46, %c0_47] : memref<32x32xbf16, #tpu.memory_space<vmem>>, vector<32x32xbf16>
    %137 = arith.truncf %135 : vector<8x32xf32> to vector<8x32xbf16>
    %cst_48 = arith.constant dense<0.000000e+00> : vector<8x32xf32>
    %138 = tpu.matmul %137, %136, %cst_48 {dimension_numbers = #tpu.dot_dimension_numbers<[1], [0], [0], [1], [0, 0, 1, 1], [], []>} : vector<8x32xbf16>, vector<32x32xbf16>, vector<8x32xf32> -> vector<8x32xf32>
    %c0_49 = arith.constant 0 : index
    %c0_50 = arith.constant 0 : index
    %139 = vector.load %arg8[%c0_49, %c0_50] : memref<1x32xf32, #tpu.memory_space<vmem>>, vector<1x32xf32>
    %140 = vector.broadcast %139 : vector<1x32xf32> to vector<8x32xf32>
    %141 = arith.addf %138, %140 : vector<8x32xf32>
    %142 = arith.addf %141, %26 : vector<8x32xf32>
    %c0_51 = arith.constant 0 : index
    %c0_52 = arith.constant 0 : index
    %143 = vector.load %arg9[%c0_51, %c0_52] : memref<1x32xf32, #tpu.memory_space<vmem>>, vector<1x32xf32>
    %c0_53 = arith.constant 0 : index
    %c0_54 = arith.constant 0 : index
    %144 = vector.load %arg10[%c0_53, %c0_54] : memref<1x32xf32, #tpu.memory_space<vmem>>, vector<1x32xf32>
    %cst_55 = arith.constant dense<0.000000e+00> : vector<8xf32>
    %145 = vector.multi_reduction <add>, %142, %cst_55 [1] : vector<8x32xf32> to vector<8xf32>
    %146 = vector.shape_cast %145 : vector<8xf32> to vector<8x1xf32>
    %cst_56 = arith.constant 3.200000e+01 : f32
    %147 = vector.broadcast %cst_56 : f32 to vector<8x1xf32>
    %148 = arith.divf %146, %147 : vector<8x1xf32>
    %149 = vector.broadcast %148 : vector<8x1xf32> to vector<8x32xf32>
    %150 = arith.subf %142, %149 : vector<8x32xf32>
    %151 = vector.broadcast %148 : vector<8x1xf32> to vector<8x32xf32>
    %152 = arith.subf %142, %151 : vector<8x32xf32>
    %153 = arith.mulf %150, %152 : vector<8x32xf32>
    %cst_57 = arith.constant dense<0.000000e+00> : vector<8xf32>
    %154 = vector.multi_reduction <add>, %153, %cst_57 [1] : vector<8x32xf32> to vector<8xf32>
    %155 = vector.shape_cast %154 : vector<8xf32> to vector<8x1xf32>
    %cst_58 = arith.constant 3.200000e+01 : f32
    %156 = vector.broadcast %cst_58 : f32 to vector<8x1xf32>
    %157 = arith.divf %155, %156 : vector<8x1xf32>
    %158 = vector.broadcast %148 : vector<8x1xf32> to vector<8x32xf32>
    %159 = arith.subf %142, %158 : vector<8x32xf32>
    %cst_59 = arith.constant 9.99999996E-13 : f32
    %160 = vector.broadcast %cst_59 : f32 to vector<8x1xf32>
    %161 = arith.addf %157, %160 : vector<8x1xf32>
    %162 = math.rsqrt %161 : vector<8x1xf32>
    %163 = vector.broadcast %162 : vector<8x1xf32> to vector<8x32xf32>
    %164 = arith.mulf %159, %163 : vector<8x32xf32>
    %165 = vector.broadcast %143 : vector<1x32xf32> to vector<8x32xf32>
    %166 = arith.mulf %164, %165 : vector<8x32xf32>
    %167 = vector.broadcast %144 : vector<1x32xf32> to vector<8x32xf32>
    %168 = arith.addf %166, %167 : vector<8x32xf32>
    %c0_60 = arith.constant 0 : index
    %c0_61 = arith.constant 0 : index
    %169 = vector.load %arg11[%c0_60, %c0_61] : memref<32x64xbf16, #tpu.memory_space<vmem>>, vector<32x64xbf16>
    %170 = arith.truncf %168 : vector<8x32xf32> to vector<8x32xbf16>
    %cst_62 = arith.constant dense<0.000000e+00> : vector<8x64xf32>
    %171 = tpu.matmul %170, %169, %cst_62 {dimension_numbers = #tpu.dot_dimension_numbers<[1], [0], [0], [1], [0, 0, 1, 1], [], []>} : vector<8x32xbf16>, vector<32x64xbf16>, vector<8x64xf32> -> vector<8x64xf32>
    %c0_63 = arith.constant 0 : index
    %c0_64 = arith.constant 0 : index
    %172 = vector.load %arg12[%c0_63, %c0_64] : memref<1x64xf32, #tpu.memory_space<vmem>>, vector<1x64xf32>
    %173 = vector.broadcast %172 : vector<1x64xf32> to vector<8x64xf32>
    %174 = arith.addf %171, %173 : vector<8x64xf32>
    %cst_65 = arith.constant 5.000000e-01 : f32
    %175 = vector.broadcast %cst_65 : f32 to vector<8x64xf32>
    %176 = arith.mulf %175, %174 : vector<8x64xf32>
    %cst_66 = arith.constant 4.471500e-02 : f32
    %177 = vector.broadcast %cst_66 : f32 to vector<8x64xf32>
    %178 = arith.mulf %177, %174 : vector<8x64xf32>
    %179 = arith.mulf %178, %174 : vector<8x64xf32>
    %180 = arith.mulf %179, %174 : vector<8x64xf32>
    %181 = arith.addf %174, %180 : vector<8x64xf32>
    %cst_67 = arith.constant 0.797884583 : f32
    %182 = vector.broadcast %cst_67 : f32 to vector<8x64xf32>
    %183 = arith.mulf %182, %181 : vector<8x64xf32>
    %184 = math.tanh %183 : vector<8x64xf32>
    %cst_68 = arith.constant 1.000000e+00 : f32
    %185 = vector.broadcast %cst_68 : f32 to vector<8x64xf32>
    %186 = arith.addf %185, %184 : vector<8x64xf32>
    %187 = arith.mulf %176, %186 : vector<8x64xf32>
    %c0_69 = arith.constant 0 : index
    %c0_70 = arith.constant 0 : index
    %188 = vector.load %arg13[%c0_69, %c0_70] : memref<64x32xbf16, #tpu.memory_space<vmem>>, vector<64x32xbf16>
    %189 = arith.truncf %187 : vector<8x64xf32> to vector<8x64xbf16>
    %cst_71 = arith.constant dense<0.000000e+00> : vector<8x32xf32>
    %190 = tpu.matmul %189, %188, %cst_71 {dimension_numbers = #tpu.dot_dimension_numbers<[1], [0], [0], [1], [0, 0, 1, 1], [], []>} : vector<8x64xbf16>, vector<64x32xbf16>, vector<8x32xf32> -> vector<8x32xf32>
    %c0_72 = arith.constant 0 : index
    %c0_73 = arith.constant 0 : index
    %191 = vector.load %arg14[%c0_72, %c0_73] : memref<1x32xf32, #tpu.memory_space<vmem>>, vector<1x32xf32>
    %192 = vector.broadcast %191 : vector<1x32xf32> to vector<8x32xf32>
    %193 = arith.addf %190, %192 : vector<8x32xf32>
    %194 = arith.addf %193, %168 : vector<8x32xf32>
    %c0_74 = arith.constant 0 : index
    %c0_75 = arith.constant 0 : index
    %195 = vector.load %arg15[%c0_74, %c0_75] : memref<1x32xf32, #tpu.memory_space<vmem>>, vector<1x32xf32>
    %c0_76 = arith.constant 0 : index
    %c0_77 = arith.constant 0 : index
    %196 = vector.load %arg16[%c0_76, %c0_77] : memref<1x32xf32, #tpu.memory_space<vmem>>, vector<1x32xf32>
    %cst_78 = arith.constant dense<0.000000e+00> : vector<8xf32>
    %197 = vector.multi_reduction <add>, %194, %cst_78 [1] : vector<8x32xf32> to vector<8xf32>
    %198 = vector.shape_cast %197 : vector<8xf32> to vector<8x1xf32>
    %cst_79 = arith.constant 3.200000e+01 : f32
    %199 = vector.broadcast %cst_79 : f32 to vector<8x1xf32>
    %200 = arith.divf %198, %199 : vector<8x1xf32>
    %201 = vector.broadcast %200 : vector<8x1xf32> to vector<8x32xf32>
    %202 = arith.subf %194, %201 : vector<8x32xf32>
    %203 = vector.broadcast %200 : vector<8x1xf32> to vector<8x32xf32>
    %204 = arith.subf %194, %203 : vector<8x32xf32>
    %205 = arith.mulf %202, %204 : vector<8x32xf32>
    %cst_80 = arith.constant dense<0.000000e+00> : vector<8xf32>
    %206 = vector.multi_reduction <add>, %205, %cst_80 [1] : vector<8x32xf32> to vector<8xf32>
    %207 = vector.shape_cast %206 : vector<8xf32> to vector<8x1xf32>
    %cst_81 = arith.constant 3.200000e+01 : f32
    %208 = vector.broadcast %cst_81 : f32 to vector<8x1xf32>
    %209 = arith.divf %207, %208 : vector<8x1xf32>
    %210 = vector.broadcast %200 : vector<8x1xf32> to vector<8x32xf32>
    %211 = arith.subf %194, %210 : vector<8x32xf32>
    %cst_82 = arith.constant 9.99999996E-13 : f32
    %212 = vector.broadcast %cst_82 : f32 to vector<8x1xf32>
    %213 = arith.addf %209, %212 : vector<8x1xf32>
    %214 = math.rsqrt %213 : vector<8x1xf32>
    %215 = vector.broadcast %214 : vector<8x1xf32> to vector<8x32xf32>
    %216 = arith.mulf %211, %215 : vector<8x32xf32>
    %217 = vector.broadcast %195 : vector<1x32xf32> to vector<8x32xf32>
    %218 = arith.mulf %216, %217 : vector<8x32xf32>
    %219 = vector.broadcast %196 : vector<1x32xf32> to vector<8x32xf32>
    %220 = arith.addf %218, %219 : vector<8x32xf32>
    %c0_83 = arith.constant 0 : index
    %c0_84 = arith.constant 0 : index
    %221 = vector.load %arg17[%c0_83, %c0_84] : memref<8x32xf32, #tpu.memory_space<vmem>>, vector<8x32xf32>
    tpu.vector_store %arg17[%c0_83, %c0_84], %220 {strides = array<i32>} : memref<8x32xf32, #tpu.memory_space<vmem>>, vector<8x32xf32>,
    return
  }
  func.func @transform_0(%arg0: i32) -> (i32, i32) {
    %c0_i32 = arith.constant 0 : i32
    %c0_i32_0 = arith.constant 0 : i32
    return %arg0, %c0_i32 : i32, i32
  }
  func.func @transform_1(%arg0: i32) -> (i32, i32, i32) {
    %c0_i32 = arith.constant 0 : i32
    %c0_i32_0 = arith.constant 0 : i32
    %c0_i32_1 = arith.constant 0 : i32
    return %arg0, %c0_i32, %c0_i32_0 : i32, i32, i32
  }
  func.func @transform_2(%arg0: i32) -> (i32, i32) {
    %c0_i32 = arith.constant 0 : i32
    %c0_i32_0 = arith.constant 0 : i32
    %c0_i32_1 = arith.constant 0 : i32
    return %c0_i32, %c0_i32_0 : i32, i32
  }
  func.func @transform_3(%arg0: i32) -> (i32, i32) {
    %c0_i32 = arith.constant 0 : i32
    %c0_i32_0 = arith.constant 0 : i32
    %c0_i32_1 = arith.constant 0 : i32
    return %c0_i32, %c0_i32_0 : i32, i32
  }
  func.func @transform_4(%arg0: i32) -> (i32, i32) {
    %c0_i32 = arith.constant 0 : i32
    %c0_i32_0 = arith.constant 0 : i32
    %c0_i32_1 = arith.constant 0 : i32
    return %c0_i32, %c0_i32_0 : i32, i32
  }
  func.func @transform_5(%arg0: i32) -> (i32, i32) {
    %c0_i32 = arith.constant 0 : i32
    %c0_i32_0 = arith.constant 0 : i32
    %c0_i32_1 = arith.constant 0 : i32
    return %c0_i32, %c0_i32_0 : i32, i32
  }
  func.func @transform_6(%arg0: i32) -> (i32, i32) {
    %c0_i32 = arith.constant 0 : i32
    %c0_i32_0 = arith.constant 0 : i32
    %c0_i32_1 = arith.constant 0 : i32
    return %c0_i32, %c0_i32_0 : i32, i32
  }
  func.func @transform_7(%arg0: i32) -> (i32, i32) {
    %c0_i32 = arith.constant 0 : i32
    %c0_i32_0 = arith.constant 0 : i32
    %c0_i32_1 = arith.constant 0 : i32
    return %c0_i32, %c0_i32_0 : i32, i32
  }
  func.func @transform_8(%arg0: i32) -> (i32, i32) {
    %c0_i32 = arith.constant 0 : i32
    %c0_i32_0 = arith.constant 0 : i32
    %c0_i32_1 = arith.constant 0 : i32
    return %c0_i32, %c0_i32_0 : i32, i32
  }
  func.func @transform_9(%arg0: i32) -> (i32, i32) {
    %c0_i32 = arith.constant 0 : i32
    %c0_i32_0 = arith.constant 0 : i32
    %c0_i32_1 = arith.constant 0 : i32
    return %c0_i32, %c0_i32_0 : i32, i32
  }
  func.func @transform_10(%arg0: i32) -> (i32, i32) {
    %c0_i32 = arith.constant 0 : i32
    %c0_i32_0 = arith.constant 0 : i32
    %c0_i32_1 = arith.constant 0 : i32
    return %c0_i32, %c0_i32_0 : i32, i32
  }
  func.func @transform_11(%arg0: i32) -> (i32, i32) {
    %c0_i32 = arith.constant 0 : i32
    %c0_i32_0 = arith.constant 0 : i32
    %c0_i32_1 = arith.constant 0 : i32
    return %c0_i32, %c0_i32_0 : i32, i32
  }
  func.func @transform_12(%arg0: i32) -> (i32, i32) {
    %c0_i32 = arith.constant 0 : i32
    %c0_i32_0 = arith.constant 0 : i32
    %c0_i32_1 = arith.constant 0 : i32
    return %c0_i32, %c0_i32_0 : i32, i32
  }
  func.func @transform_13(%arg0: i32) -> (i32, i32) {
    %c0_i32 = arith.constant 0 : i32
    %c0_i32_0 = arith.constant 0 : i32
    %c0_i32_1 = arith.constant 0 : i32
    return %c0_i32, %c0_i32_0 : i32, i32
  }
  func.func @transform_14(%arg0: i32) -> (i32, i32) {
    %c0_i32 = arith.constant 0 : i32
    %c0_i32_0 = arith.constant 0 : i32
    %c0_i32_1 = arith.constant 0 : i32
    return %c0_i32, %c0_i32_0 : i32, i32
  }
  func.func @transform_15(%arg0: i32) -> (i32, i32) {
    %c0_i32 = arith.constant 0 : i32
    %c0_i32_0 = arith.constant 0 : i32
    %c0_i32_1 = arith.constant 0 : i32
    return %c0_i32, %c0_i32_0 : i32, i32
  }
  func.func @transform_16(%arg0: i32) -> (i32, i32) {
    %c0_i32 = arith.constant 0 : i32
    %c0_i32_0 = arith.constant 0 : i32
    return %arg0, %c0_i32 : i32, i32
  }
}

</mosaic_0001>

<bundles_post_ra>
// kernel: tpu_custom_call.1
= control target key start
LH: loop header
LB: loop body
LE: loop exit
PB: predicated region body
PF: predicated region fallthrough
CT: control target
= control target key end

     0   :  { %6 = vsyncpa [#allocation3], 0  ;;  %s441_s0 = inlined_call_operand.hbm [shape: f32[8,128], index: 0, kind: input, shape index: {}]   ;;  %s442_s1 = inlined_call_operand.hbm [shape: f32[16,128], index: 1, kind: output, shape index: {}]  }
   0x1   :  { %7 = vsyncpa [#allocation4], 0 }
   0x2   :  { %9 = vsyncpa [#allocation4 + $0x1], 0  ;;  %s357_s6 = smov 0   ;;  %s359_s7 = smov 0  }
   0x3   :  { %s361_s8 = smov 0   ;;  %s363_s9 = smov 0  }
   0x4 LB: > { %s378_s10 = sadd.s32 4294967295, %s344_s9   ;;  %s188_s11 = sadd.s32 4294967294, %s344_s9   ;;  %s344_s9 = sphi %s363_s9, %s448_s9   ;;  %s340_s8 = sphi %s361_s8, %s447_s8   ;;  %s336_s7 = sphi %s359_s7, %s446_s7   ;;  %s332_s6 = sphi %s357_s6, %s445_s6  }
   0x5   : > { %s382_s12 = sadd.s32 1, %s344_s9   ;;  %s43_s13 = sadd.s32 1, %s340_s8 }
   0x6   : > { %s40_s14 = ssub.s32 %s344_s9, %s382_s12  ;;  %p53_p0 = scmp.ne.s32.totalorder %s340_s8, %s336_s7 }
   0x7   : > { %p41_p1 = scmp.eq.s32.totalorder %s40_s14, 0  ;;  %p54_p2 = scmp.eq.s32.totalorder %s378_s10, 1 }
   0x8   : > { %p59_p3 = scmp.ne.s32.totalorder %s336_s7, %s332_s6  ;;  %p60_p4 = scmp.eq.s32.totalorder %s188_s11, 1 }
   0x9   : > { %s393_s15 = scalar_select %p41_p1, %s340_s8, %s43_s13  }
   0xa   : > { %p395_p5 = por %p54_p2, %p53_p0  ;;  %p399_p6 = por %p60_p4, %p59_p3 }
   0xb   : > { %p189_p7 = scmp.ge.s32.totalorder %s344_s9, 1  ;;  %p67_p8 = scmp.lt.s32.totalorder %s344_s9, 3 }
   0xc   : > { %p212_p9 = scmp.eq.s32.totalorder %s378_s10, 0  ;;  %s79_s20 = sshll.u32 %s441_s0, 4  ;;  %s80_s20 = int_to_ptr.hbm [resolvable:$true] %s79_s20 }
   0xd   : > { %p68_p10 = pnand %p189_p7, %p67_p8  ;;  %s346_s21 = smov [#allocation2]  }
   0xe   : > { %s81_s22 = sshll.u32 %s346_s21, 4  ;;  %s82_s22 = int_to_ptr.vmem [resolvable:$true] %s81_s22 }
   0xf   : > { %p204_p11 = pneg %p68_p10  ;;  %94 = sbr.rel (%p68_p10) target bundleno = 37 (0x25), region = 24 }
  0x11   : > { %p205_p12 = pnand %p212_p9, %p204_p11 }
  0x13   : > { %207 = dma.hbm_to_vmem [thread:$0]  (!%p205_p12), %s80_s20, 128, %s82_s22, [#allocation3]  }
  0x14   : > { %323 = dma.done.wait (%p212_p9), [#allocation3], 128  }
  0x15   : > { %325 = vsyncadd (%p212_p9), [#allocation3], 4294967168  ;;  %s107_s23 = sand.u32 1, %s336_s7   ;;  %s195_s24 = sshll.u32 %s378_s10, 3  ;;  %v110_v0 = vld [vmem:[#allocation2] sm:$0xff] }
  0x16   : > { %s193_s25 = sshll.u32 %s107_s23, 3  ;;  %s124_s28 = scalar_lea.hbm %s442_s1, %s195_s24  ;;  %v111_v1 = vmul.f32 2.0, %v110_v0 }
  0x17   : > { %s109_s29 = scalar_lea.vmem [#allocation5], %s193_s25  ;;  %s128_s2 = sshll.u32 %s124_s28, 4  ;;  %s129_s2 = int_to_ptr.hbm [resolvable:$true] %s128_s2 }
  0x18   : > { %s126_s30 = sshll.u32 %s109_s29, 4  ;;  %112 = vst [vmem:[%s109_s29] sm:$0xff] %v111_v1  ;;  %s114_s3 = scalar_lea.sflag [#allocation4], %s107_s23  ;;  %s127_s30 = int_to_ptr.vmem [resolvable:$true] %s126_s30 }
  0x19   : > { %s292_s4 = sshra.s32 %s129_s2, 4  ;;  %s298_s13 = scalar_lea.hbm %s442_s1, 16  ;;  %s293_s4 = int_to_ptr.hbm [resolvable:$true] %s292_s4 }
  0x1a   : > { %s294_s5 = scalar_lea.hbm %s293_s4, 8  ;;  %p299_p2 = scmp.lt.s32.totalorder %s293_s4, %s442_s1 }
  0x1b   : > { %p295_p13 = scmp.ne.s32.totalorder %s293_s4, %s294_s5  ;;  %p300_p3 = scmp.lt.s32.totalorder %s298_s13, %s294_s5 }
  0x1d   : > { %p296_p0 = pnand %p295_p13, %p395_p5  ;;  %p301_p4 = por %p300_p3, %p299_p2 }
  0x1f   : > { %p297_p1 = pneg %p296_p0 }
  0x21   : > { %p302_p7 = pnand %p301_p4, %p297_p1 }
  0x23   : > { %305 = shalt.err (!%p302_p7)
}
  0x24   : > { %202 = dma.vmem_to_hbm [thread:$0]  (%p395_p5), %s127_s30, 128, %s129_s2, %s114_s3  }
  0x25 PF: > { %p214_p8 = scmp.ge.s32.totalorder %s344_s9, 2  ;;  %s140_s19 = sand.u32 1, %s332_s6  }
  0x26   : > { %s141_s20 = scalar_lea.sflag [#allocation4], %s140_s19 }
  0x27   : > { %p209_p9 = pnand %p214_p8, %p399_p6 }
  0x29   : > { %p210_p10 = pneg %p209_p9 }
  0x2b   : > { %327 = dma.done.wait (%p210_p10), %s141_s20, 128  }
  0x2c   : > { %329 = vsyncadd (%p210_p10), %s141_s20, 4294967168  ;;  %p12_p11 = scmp.ge.s32.totalorder %s382_s12, 4   ;;  %s445_s6 = smov %s336_s7 }
  0x2d   : > { %s446_s7 = smov %s340_s8  ;;  %s447_s8 = smov %s393_s15 }
  0x2e   : > { %s448_s9 = smov %s382_s12  ;;  %14 = sbr.rel (!%p12_p11) target bundleno = 4 (0x4), region = 61 }
  0x33   :  { %147 = vsyncpa [#allocation3], 1 }
  0x34   :  { %149 = vsyncpa [#allocation3 + $0x1], 1 }
  0x35   :  { %150 = vsyncpa [#allocation4], 1 }
  0x36   :  { %152 = vsyncpa [#allocation4 + $0x1], 1 }

// kernel: tpu_custom_call.1
= control target key start
LH: loop header
LB: loop body
LE: loop exit
PB: predicated region body
PF: predicated region fallthrough
CT: control target
= control target key end

     0   :  { %s1895_s0 = inlined_call_operand.vmem [shape: f32[16,32], index: 0, kind: input, shape index: {}]   ;;  %s1896_s1 = inlined_call_operand.hbm [shape: f32[2,1,8], index: 1, kind: input, shape index: {}]   ;;  %s1897_s2 = inlined_call_operand.vmem [shape: f32[1,32], index: 2, kind: input, shape index: {}]   ;;  %s1898_s3 = inlined_call_operand.vmem [shape: f32[1,32], index: 3, kind: input, shape index: {}]   ;;  %s1899_s4 = inlined_call_operand.vmem [shape: bf16[32,96], index: 4, kind: input, shape index: {}]   ;;  %s1900_s5 = inlined_call_operand.vmem [shape: f32[1,96], index: 5, kind: input, shape index: {}]   ;;  %s1901_s6 = inlined_call_operand.vmem [shape: bf16[32,32], index: 6, kind: input, shape index: {}]   ;;  %s1902_s7 = inlined_call_operand.vmem [shape: f32[1,32], index: 7, kind: input, shape index: {}]   ;;  %s1903_s8 = inlined_call_operand.vmem [shape: f32[1,32], index: 8, kind: input, shape index: {}]   ;;  %s1904_s9 = inlined_call_operand.vmem [shape: f32[1,32], index: 9, kind: input, shape index: {}]   ;;  %s1905_s10 = inlined_call_operand.hbm [shape: bf16[32,64], index: 10, kind: input, shape index: {}]   ;;  %s1906_s11 = inlined_call_operand.vmem [shape: f32[1,64], index: 11, kind: input, shape index: {}]   ;;  %s1907_s12 = inlined_call_operand.vmem [shape: bf16[64,32], index: 12, kind: input, shape index: {}]   ;;  %s1908_s13 = inlined_call_operand.vmem [shape: f32[1,32], index: 13, kind: input, shape index: {}]   ;;  %s1909_s14 = inlined_call_operand.vmem [shape: f32[1,32], index: 14, kind: input, shape index: {}]   ;;  %s1910_s15 = inlined_call_operand.vmem [shape: f32[1,32], index: 15, kind: input, shape index: {}]   ;;  %s1911_s16 = inlined_call_operand.hbm [shape: f32[16,32], index: 16, kind: output, shape index: {}]  }
   0x1   :  { %1919 = sst [smem:[#allocation18_spill]] %s1895_s0 }
   0x2   :  { %1920 = sst [smem:[#allocation19_spill]] %s1905_s10 }
   0x3   :  { %1921 = sst [smem:[#allocation20_spill]] %s1910_s15 }
   0x4   :  { %21 = vsyncpa [#allocation4], 0 }
   0x5   :  { %23 = vsyncpa [#allocation4 + $0x1], 0 }
   0x6   :  { %24 = vsyncpa [#allocation7], 0 }
   0x7   :  { %25 = vsyncpa [#allocation5], 0 }
   0x8   :  { %27 = vsyncpa [#allocation5 + $0x1], 0  ;;  %s1635_s21 = smov 0   ;;  %s1637_s22 = smov 0  }
   0x9   :  { %s1639_s23 = smov 0   ;;  %s1641_s24 = smov 0  }
   0xa LB: > { %1922 = sst [smem:[#allocation12_spill]] %s1518_s21  ;;  %s1659_s28 = sadd.s32 4294967295, %s1530_s24   ;;  %s1530_s24 = sphi %s1641_s24, %s1940_s24   ;;  %s1526_s23 = sphi %s1639_s23, %s1942_s23   ;;  %s1522_s22 = sphi %s1637_s22, %s1944_s22   ;;  %s1518_s21 = sphi %s1635_s21, %s1943_s21  }
   0xb   : > { %1923 = sst [smem:[#allocation13_spill]] %s1526_s23  ;;  %p1217_p0 = scmp.ge.s32.totalorder %s1530_s24, 1 }
   0xc   : > { %1924 = sst [smem:[#allocation14_spill]] %s1530_s24  ;;  %p80_p1 = scmp.eq.s32.totalorder %s1659_s28, 0 }
   0xd   : > { %s1925_s10 = sld [smem:[#allocation19_spill]]  ;;  %p410_p2 = scmp.lt.s32.totalorder %s1530_s24, 3 }
   0xe   : > { %s1532_s30 = smov [#allocation6]   ;;  %s1533_s17 = smov 64  }
   0xf   : > { %p1664_p3 = pnand %p1217_p0, %p410_p2  ;;  %s447_s0 = sshll.u32 %s1532_s30, 4  ;;  %s448_s0 = int_to_ptr.vmem [resolvable:$true] %s447_s0 }
  0x10   : > { %s1534_s18 = smov 4   ;;  %s1216_s19 = sadd.s32 4294967294, %s1530_s24  }
  0x11   : > { %p1298_p4 = pneg %p1664_p3  ;;  %s1675_s20 = sadd.s32 1, %s1530_s24  }
  0x12   : > { %1927 = sst [smem:[#allocation15_spill]] %s1675_s20  ;;  %s66_s25 = sadd.s32 1, %s1526_s23 }
  0x13   : > { %s445_s27 = sshll.u32 %s1925_s10, 4  ;;  %p1299_p6 = pnand %p1298_p4, %p80_p1  ;;  %s446_s27 = int_to_ptr.hbm [resolvable:$true] %s445_s27 }
  0x14   : > { %s63_s26 = ssub.s32 %s1530_s24, %s1675_s20  ;;  %p73_p7 = scmp.ne.s32.totalorder %s1526_s23, %s1522_s22 }
  0x15   : > { %1301 = dma.hbm_to_vmem [thread:$0]  (!%p1299_p6), %s446_s27, 256, %s448_s0, [#allocation7], %s1533_s17, %s1533_s17, %s1534_s18  }
  0x16   : > { %p64_p8 = scmp.eq.s32.totalorder %s63_s26, 0  ;;  %p74_p9 = scmp.eq.s32.totalorder %s1530_s24, 0 }
  0x17   : > { %p79_p10 = scmp.ne.s32.totalorder %s1522_s22, %s1518_s21  ;;  %p397_p11 = scmp.eq.s32.totalorder %s1659_s28, 1 }
  0x18   : > { %s1687_s30 = scalar_select %p64_p8, %s1526_s23, %s66_s25  }
  0x19   : > { %p1691_p12 = por %p80_p1, %p79_p10  ;;  %p1695_p13 = por %p397_p11, %p73_p7 }
  0x1a   : > { %1928 = sst [smem:[#allocation16_spill]] %s1687_s30  ;;  %p403_p0 = scmp.eq.s32.totalorder %s1216_s19, 1 }
  0x1b   : > { %s1930_s27 = scalar_select %p1695_p13, 1, 0 }
  0x1c   : > { %p75_p2 = por %p74_p9, %p73_p7  ;;  %s483_s0 = sand.u32 1, %s1526_s23  }
  0x1d   : > { %1931 = sst [smem:[#allocation17_spill]] %s1930_s27  ;;  %p1700_p4 = por %p403_p0, %p79_p10 }
  0x1e   : > { %p1311_p6 = scmp.lt.s32.totalorder %s1530_s24, 2  ;;  %s489_s26 = scalar_lea.hbm %s1896_s1, %s1530_s24 }
  0x1f   : > { %s491_s30 = sshll.u32 %s489_s26, 4  ;;  %s486_s20 = scalar_lea.vmem [#allocation3], %s483_s0  ;;  %s492_s30 = int_to_ptr.hbm [resolvable:$true] %s491_s30 }
  0x20   : > { %s493_s21 = sshll.u32 %s486_s20, 4  ;;  %p1709_p8 = pnand %p1311_p6, %p75_p2  ;;  %s494_s21 = int_to_ptr.vmem [resolvable:$true] %s493_s21 }
  0x21   : > { %s484_s19 = scalar_lea.sflag [#allocation4], %s483_s0  ;;  %s1430_s23 = sshra.s32 %s492_s30, 4  ;;  %s1431_s23 = int_to_ptr.hbm [resolvable:$true] %s1430_s23 }
  0x22   : > { %s1432_s27 = scalar_lea.hbm %s1431_s23, 1  ;;  %p1434_p9 = pneg %p1709_p8 }
  0x23   : > { %p1433_p7 = scmp.ne.s32.totalorder %s1431_s23, %s1432_s27  ;;  %s1437_s20 = scalar_lea.hbm %s1896_s1, 2 }
  0x24   : > { %p1438_p0 = scmp.lt.s32.totalorder %s1431_s23, %s1896_s1  ;;  %p1439_p2 = scmp.lt.s32.totalorder %s1437_s20, %s1432_s27 }
  0x25   : > { %p1435_p10 = pnand %p1434_p9, %p1433_p7 }
  0x26   : > { %p1440_p6 = por %p1439_p2, %p1438_p0 }
  0x27   : > { %p1436_p11 = pneg %p1435_p10 }
  0x29   : > { %p1441_p5 = pnand %p1440_p6, %p1436_p11 }
  0x2b   : > { %1444 = shalt.err (!%p1441_p5)
}
  0x2c   : > { %1305 = dma.hbm_to_vmem [thread:$0]  (!%p1709_p8), %s492_s30, 16, %s494_s21, %s484_s19  }
  0x2d   : > { %502 = sbr.rel (%p1664_p3) target bundleno = 2218 (0x8aa), region = 84  ;;  %s1726_s0 = sand.u32 (!%p1664_p3), 1, %s1522_s22  }
  0x2e   : > { %s505_s18 = scalar_lea.sflag (!%p1664_p3), [#allocation4], %s1726_s0  ;;  %s507_s25 = scalar_lea.vmem (!%p1664_p3), [#allocation3], %s1726_s0 }
  0x32   : > { %1505 = dma.done.wait (%p1691_p12), %s505_s18, 16  }
  0x33   : > { %1507 = vsyncadd (%p1691_p12), %s505_s18, 4294967280 }
  0x34   : > { %1509 = dma.done.wait (%p80_p1), [#allocation7], 256  }
  0x35   : > { %1511 = vsyncadd (%p80_p1), [#allocation7], 4294967040  ;;  %p565_p3 = scmp.lt.s32.totalorder %s1659_s28, 1  ;;  %s1934_s29 = sld [smem:[#allocation18_spill]]  ;;  %vm573_vm0 = vcmask 261120   ;;  %v1535_v2 = vmov 32.0  }
  0x36   : > { %1374 = vrcp.f32 %v1535_v2  ;;  %v1281_v14 = vld [vmem:[%s1899_s4 + $0x8] sm:$0xff]  ;;  %v1280_v15 = vld [vmem:[%s1899_s4] sm:$0xff]  ;;  %s1538_s10 = smov 96   ;;  %s1539_s27 = smov 72   ;;  %vm655_vm5 = vcmask 64512   ;;  %vm697_vm6 = vcmask 1043456  }
  0x37   : > { %s566_s15 = scalar_select %p565_p3, %s1659_s28, 1  ;;  %644 = vmatpush.bf16.msra.mxu0 %v1281_v14  ;;  %v1364_v25 = vld [vmem:[%s1897_s2] ss:$0 sm:$0xff]  ;;  %vm777_vm7 = vcmask 130112   ;;  %vm841_vm8 = vcmask 195712   ;;  %vm905_vm9 = vcmask 261312  }
  0x38   : > { %v1365_v28 = vld [vmem:[%s1898_s3] ss:$0 sm:$0xff]  ;;  %s1540_s19 = smov 88   ;;  %s1541_s20 = smov 112   ;;  %vm1061_vm13 = vcmask 523264  }
  0x39   : > { %s1223_s21 = sshll.u32 %s566_s15, 3  ;;  %v1366_v32 = vld [vmem:[%s1900_s5] ss:$0 sm:$0xff]  ;;  %s1542_s26 = smov 80  }
  0x3a   : > { %v611_v48 = vld [vmem:[%s507_s25] sm:$0x1]  ;;  %s1543_s25 = smov 64   ;;  %s1544_s18 = smov 56  }
  0x3b   : > { %s568_s30 = scalar_lea.vmem %s1934_s29, %s1223_s21  ;;  %645 = vmatpush.bf16.msra.mxu0 %v1280_v15  ;;  %s1536_s29 = smov 104   ;;  %v612_v49 = vsub.f32 1.0, %v611_v48 }
  0x3c   : > { %v570_v0 = vld [vmem:[%s568_s30] sm:$0xff]  ;;  %v1375_v3 = vpop.eup %1374  ;;  %s1537_s30 = smov 120   ;;  %s1545_s15 = smov 40  }
  0x3d   : > { %v574_v1 = vsel %vm573_vm0, %v570_v0, 0.0  ;;  %v578_v4 = vmul.f32 32.0, %v1375_v3  ;;  %vm582_vm1 = vweird.f32 %v1375_v3  ;;  %v613_v50 = vmul.f32 -10000.0, %v612_v49  ;;  %s1546_s21 = smov 48   ;;  %s1547_s23 = smov 8  }
  0x3e   : > { %575 = vadd.xlane.f32.xlu0 %v574_v1  ;;  %s1548_s24 = smov 24  }
  0x3f   : > { %v579_v5 = vsub.f32 1.0, %v578_v4  ;;  %v677_v51 = vperm.slane %v613_v50, 0 }
  0x41   : > { %v580_v6 = vmul.f32 %v1375_v3, %v579_v5 }
  0x43   : > { %v581_v7 = vadd.f32 %v1375_v3, %v580_v6 }
  0x45   : > { %v1744_v8 = vsel %vm582_vm1, %v1375_v3, %v581_v7 }
  0xb1   : > { %v576_v9 = vpop.xlane.xlu0 %575 }
  0xb2   : > { %v584_v10 = vmul.f32 %v1744_v8, %v576_v9 }
  0xb4   : > { %v585_v11 = vsub.f32 %v570_v0, %v584_v10 }
  0xb6   : > { %v586_v12 = vmul.f32 %v585_v11, %v585_v11 }
  0xb8   : > { %v587_v13 = vsel %vm573_vm0, %v586_v12, 0.0 }
  0xb9   : > { %588 = vadd.xlane.f32.xlu0 %v587_v13 }
 0x12c   : > { %v589_v16 = vpop.xlane.xlu0 %588 }
 0x12d   : > { %v590_v17 = vmul.f32 %v589_v16, %v1744_v8 }
 0x12f   : > { %v591_v18 = vadd.f32 1e-12, %v590_v17 }
 0x131   : > { %1376 = vrsqrt.f32 %v591_v18  ;;  %vm598_vm3 = vweird.f32 %v591_v18 }
 0x137   : > { %v1377_v19 = vpop.eup %1376 }
 0x138   : > { %v593_v20 = vmul.f32 %v1377_v19, %v591_v18  ;;  %vm599_vm2 = vweird.f32 %v1377_v19 }
 0x139   : > { %vm600_vm4 = vmor %vm598_vm3, %vm599_vm2 }
 0x13a   : > { %v594_v21 = vmul.f32 %v1377_v19, %v593_v20 }
 0x13c   : > { %v595_v22 = vmul.f32 0.5, %v594_v21 }
 0x13e   : > { %v596_v23 = vsub.f32 1.5, %v595_v22 }
 0x140   : > { %v597_v24 = vmul.f32 %v1377_v19, %v596_v23 }
 0x142   : > { %v601_v26 = vsel %vm600_vm4, %v1377_v19, %v597_v24 }
 0x143   : > { %v602_v27 = vmul.f32 %v601_v26, %v585_v11 }
 0x145   : > { %v606_v29 = vmul.f32 %v1364_v25, %v602_v27 }
 0x147   : > { %v1761_v30 = vadd.f32 %v1365_v28, %v606_v29 }
 0x149   : > { %v618_v31 = vpack.c.bf16 %v1761_v30, %v1761_v30 }
 0x14b   : > { %1232 = vmatmul.msk.bf16.vlgmr.msra.gmra.mxu0 %vm573_vm0, %v618_v31 }
 0x1c8   : > { %v647_v33 = vpop.f32.mrf.mxu0 }
 0x1c9   : > { %v648_v34 = vadd.f32 %v1366_v32, %v647_v33 }
 0x1cb   : > { %v1769_v35 = vpack.c.bf16 %v648_v34, %v648_v34 }
 0x1cd   : > { %843 = vrot.lane.b32.xlu0 %v1769_v35, %s1536_s29  ;;  %715 = vrot.lane.b32.xlu2 %v1769_v35, %s1537_s30  ;;  %s1549_s29 = smov 16  }
 0x1ce   : > { %653 = vrot.lane.b32.xlu1 %v1769_v35, %s1538_s10 }
 0x1d0   : > { %v649_v36 = vpop.f32.mrf.mxu0 }
 0x1d5   : > { %845 = vrot.lane.b32.xlu2 %v1769_v35, %s1539_s27 }
 0x1d6   : > { %717 = vrot.lane.b32.xlu1 %v1769_v35, %s1540_s19 }
 0x1dd   : > { %779 = vrot.lane.b32.xlu2 %v1769_v35, %s1541_s20 }
 0x1de   : > { %781 = vrot.lane.b32.xlu1 %v1769_v35, %s1542_s26 }
 0x227   : > { %v716_v37 = vpop.permute.xlu2 %715 }
 0x22f   : > { %v846_v40 = vpop.permute.xlu2 %845 }
 0x230   : > { %v851_v43 = vsel %vm655_vm5, %v846_v40, 0 }
 0x237   : > { %v780_v46 = vpop.permute.xlu2 %779 }
 0x23f   : > { %v844_v47 = vpop.permute.xlu0 %843 }
 0x240   : > { %v654_v38 = vpop.permute.xlu1 %653 }
 0x241   : > { %v660_v39 = vsel %vm655_vm5, %v654_v38, 0 }
 0x242   : > { %669 = vmatpush.bf16.xpose.msra.mxu1 %v660_v39 }
 0x248   : > { %v718_v41 = vpop.permute.xlu1 %717 }
 0x249   : > { %1233 = vmatmul.msk.bf16.vlgmr.msra.gmra.mxu1 %vm655_vm5, %v1769_v35  ;;  %v723_v42 = vsel %vm655_vm5, %v718_v41, 0 }
 0x24a   : > { %732 = vmatpush.bf16.xpose.msra.mxu3 %v723_v42 }
 0x250   : > { %v782_v44 = vpop.permute.xlu1 %781 }
 0x251   : > { %1235 = vmatmul.msk.bf16.vlgmr.msra.gmra.mxu3 %vm655_vm5, %v716_v37  ;;  %v787_v45 = vsel %vm655_vm5, %v782_v44, 0 }
 0x252   : > { %860 = vmatpush.bf16.xpose.msrb.mxu3 %v851_v43  ;;  %796 = vmatpush.bf16.xpose.msrb.mxu0 %v787_v45 }
 0x259   : > { %1237 = vmatmul.msk.bf16.vlgmr.msrb.gmra.mxu0 %vm655_vm5, %v780_v46 }
 0x261   : > { %1239 = vmatmul.msk.bf16.vlgmr.msrb.gmra.mxu3 %vm655_vm5, %v844_v47 }
 0x2c6   : > { %v671_v52 = vpop.f32.mrf.mxu1 }
 0x2c7   : > { %v675_v53 = vmul.f32 0.35355338, %v671_v52 }
 0x2c9   : > { %v679_v54 = vadd.f32 %v677_v51, %v675_v53 }
 0x2cb   : > { %v680_v55 = vsel %vm655_vm5, %v679_v54, -inf }
 0x2cc   : > { %681 = vmax.xlane.f32.xlu1 %v680_v55 }
 0x2ce   : > { %v673_v56 = vpop.f32.mrf.mxu1 }
 0x2d4   : > { %v734_v57 = vpop.f32.mrf.mxu3 }
 0x2d5   : > { %v738_v58 = vmul.f32 0.35355338, %v734_v57 }
 0x2d6   : > { %v798_v59 = vpop.f32.mrf.mxu0 }
 0x2d7   : > { %v739_v60 = vadd.f32 %v738_v58, %v677_v51  ;;  %v802_v61 = vmul.f32 0.35355338, %v798_v59 }
 0x2d9   : > { %v740_v62 = vsel %vm655_vm5, %v739_v60, -inf  ;;  %v803_v0 = vadd.f32 %v802_v61, %v677_v51 }
 0x2da   : > { %741 = vmax.xlane.f32.xlu2 %v740_v62  ;;  %v1283_v62 = vld [vmem:[%s1901_s6 + $0x8] sm:$0xff] }
 0x2db   : > { %v804_v2 = vsel %vm655_vm5, %v803_v0, -inf  ;;  %938 = vmatpush.bf16.msra.mxu0 %v1283_v62 }
 0x2dc   : > { %v736_v63 = vpop.f32.mrf.mxu3 }
 0x2dd   : > { %v1282_v63 = vld [vmem:[%s1901_s6] sm:$0xff] }
 0x2de   : > { %v800_v1 = vpop.f32.mrf.mxu0 }
 0x2df   : > { %939 = vmatpush.bf16.msra.mxu0 %v1282_v63 }
 0x2e2   : > { %805 = vmax.xlane.f32.xlu2 %v804_v2 }
 0x2e4   : > { %v862_v3 = vpop.f32.mrf.mxu3 }
 0x2e5   : > { %v866_v4 = vmul.f32 0.35355338, %v862_v3 }
 0x2e7   : > { %v867_v5 = vadd.f32 %v866_v4, %v677_v51 }
 0x2e9   : > { %v868_v6 = vsel %vm655_vm5, %v867_v5, -inf }
 0x2ea   : > { %869 = vmax.xlane.f32.xlu0 %v868_v6 }
 0x2ec   : > { %v864_v7 = vpop.f32.mrf.mxu3 }
 0x2fa   : > { %692 = vrot.lane.b32.xlu2 %v1769_v35, %s1543_s25  ;;  %s1936_s25 = sld [smem:[#allocation20_spill]] }
 0x2fe   : > { %752 = vrot.lane.b32.xlu0 %v1769_v35, %s1544_s18 }
 0x302   : > { %880 = vrot.lane.b32.xlu2 %v1769_v35, %s1545_s15 }
 0x306   : > { %816 = vrot.lane.b32.xlu0 %v1769_v35, %s1546_s21  ;;  %s1222_s21 = sshll.u32 %s1726_s0, 3 }
 0x33f   : > { %v682_v9 = vpop.xlane.xlu1 %681 }
 0x340   : > { %v683_v10 = vsub.f32 %v679_v54, %v682_v9 }
 0x342   : > { %v684_v11 = vmul.f32 1.442695, %v683_v10 }
 0x344   : > { %1378 = vpow2.f32 %v684_v11 }
 0x34a   : > { %v1379_v12 = vpop.eup %1378 }
 0x34b   : > { %v686_v13 = vsel %vm655_vm5, %v1379_v12, 0.0 }
 0x34c   : > { %687 = vadd.xlane.f32.xlu1 %v686_v13 }
 0x34d   : > { %v742_v14 = vpop.xlane.xlu2 %741 }
 0x34e   : > { %v743_v15 = vsub.f32 %v739_v60, %v742_v14 }
 0x350   : > { %v744_v16 = vmul.f32 1.442695, %v743_v15 }
 0x352   : > { %1380 = vpow2.f32 %v744_v16 }
 0x355   : > { %v806_v17 = vpop.xlane.xlu2 %805 }
 0x356   : > { %v807_v24 = vsub.f32 %v803_v0, %v806_v17  ;;  %v1285_v17 = vld [vmem:[#allocation6 + $0x8] sm:$0xff] }
 0x358   : > { %v1381_v18 = vpop.eup %1380  ;;  %v808_v26 = vmul.f32 1.442695, %v807_v24 }
 0x359   : > { %v746_v19 = vsel %vm655_vm5, %v1381_v18, 0.0 }
 0x35a   : > { %747 = vadd.xlane.f32.xlu1 %v746_v19 }
 0x35d   : > { %v870_v20 = vpop.xlane.xlu0 %869  ;;  %v693_v21 = vpop.permute.xlu2 %692 }
 0x35e   : > { %v871_v22 = vsub.f32 %v867_v5, %v870_v20  ;;  %v699_v23 = vsel %vm697_vm6, %v693_v21, 0  ;;  %v1367_v5 = vld [vmem:[%s1902_s7] ss:$0 sm:$0xff] }
 0x35f   : > { %708 = vmatpush.bf16.msra.mxu2 %v699_v23 }
 0x360   : > { %v872_v25 = vmul.f32 1.442695, %v871_v22 }
 0x362   : > { %1382 = vpow2.f32 %v872_v25 }
 0x363   : > { %1384 = vpow2.f32 %v808_v26 }
 0x365   : > { %v881_v39 = vpop.permute.xlu2 %880 }
 0x366   : > { %v886_v41 = vsel %vm697_vm6, %v881_v39, 0  ;;  %v1370_v39 = vld [vmem:[%s1906_s11] ss:$0 sm:$0xff] }
 0x368   : > { %v1383_v27 = vpop.eup %1382 }
 0x369   : > { %v874_v28 = vsel %vm655_vm5, %v1383_v27, 0.0  ;;  %v1385_v29 = vpop.eup %1384 }
 0x36a   : > { %875 = vadd.xlane.f32.xlu1 %v874_v28  ;;  %v810_v33 = vsel %vm655_vm5, %v1385_v29, 0.0 }
 0x370   : > { %v753_v31 = vpop.permute.xlu0 %752 }
 0x371   : > { %v758_v32 = vsel %vm697_vm6, %v753_v31, 0 }
 0x372   : > { %767 = vmatpush.bf16.msrb.mxu2 %v758_v32  ;;  %811 = vadd.xlane.f32.xlu1 %v810_v33 }
 0x378   : > { %v817_v34 = vpop.permute.xlu0 %816 }
 0x379   : > { %v822_v35 = vsel %vm697_vm6, %v817_v34, 0 }
 0x37a   : > { %831 = vmatpush.bf16.msrb.mxu1 %v822_v35  ;;  %v1289_v35 = vld [vmem:[%s1907_s12 + $0x18] sm:$0xff] }
 0x37b   : > { %1069 = vmatpush.bf16.msra.mxu3 %v1289_v35 }
 0x37e   : > { %1008 = vmatpush.bf16.msra.mxu1 %v1285_v17 }
 0x3bf   : > { %v688_v36 = vpop.xlane.xlu1 %687 }
 0x3c0   : > { %1386 = vrcp.f32 %v688_v36  ;;  %v1288_v36 = vld [vmem:[%s1907_s12 + $0x10] sm:$0xff] }
 0x3c1   : > { %1070 = vmatpush.bf16.msra.mxu3 %v1288_v36 }
 0x3c6   : > { %v1387_v37 = vpop.eup %1386 }
 0x3c7   : > { %v690_v38 = vmul.f32 %v1387_v37, %v1379_v12  ;;  %v1287_v37 = vld [vmem:[%s1907_s12 + $0x8] sm:$0xff] }
 0x3c8   : > { %1071 = vmatpush.bf16.msra.mxu3 %v1287_v37 }
 0x3c9   : > { %v691_v40 = vpack.c.bf16 %v690_v38, %v690_v38  ;;  %v1286_v38 = vld [vmem:[%s1907_s12] sm:$0xff] }
 0x3cb   : > { %1234 = vmatmul.msk.bf16.vlgmr.msra.gmra.mxu2 %vm655_vm5, %v691_v40 }
 0x3cc   : > { %895 = vmatpush.bf16.msra.mxu2 %v886_v41  ;;  %1072 = vmatpush.bf16.msra.mxu3 %v1286_v38 }
 0x3cd   : > { %v748_v42 = vpop.xlane.xlu1 %747 }
 0x3ce   : > { %1388 = vrcp.f32 %v748_v42 }
 0x3d4   : > { %v1389_v43 = vpop.eup %1388 }
 0x3d5   : > { %v750_v44 = vmul.f32 %v1389_v43, %v1381_v18  ;;  %v1284_v18 = vld [vmem:[#allocation6] sm:$0xff] }
 0x3d6   : > { %1009 = vmatpush.bf16.msra.mxu1 %v1284_v18 }
 0x3d7   : > { %v751_v45 = vpack.c.bf16 %v750_v44, %v750_v44 }
 0x3db   : > { %1236 = vmatmul.msk.bf16.vlgmr.msrb.gmra.mxu2 %vm655_vm5, %v751_v45 }
 0x3dd   : > { %v876_v46 = vpop.xlane.xlu1 %875 }
 0x3de   : > { %1390 = vrcp.f32 %v876_v46 }
 0x3e4   : > { %v1391_v47 = vpop.eup %1390 }
 0x3e5   : > { %v878_v48 = vmul.f32 %v1391_v47, %v1383_v27  ;;  %v812_v49 = vpop.xlane.xlu1 %811  ;;  %v1368_v27 = vld [vmem:[%s1903_s8] ss:$0 sm:$0xff] }
 0x3e6   : > { %1392 = vrcp.f32 %v812_v49 }
 0x3e7   : > { %v879_v50 = vpack.c.bf16 %v878_v48, %v878_v48 }
 0x3eb   : > { %1240 = vmatmul.msk.bf16.vlgmr.msra.gmra.mxu2 %vm655_vm5, %v879_v50 }
 0x3ec   : > { %v1393_v51 = vpop.eup %1392 }
 0x3ed   : > { %v814_v52 = vmul.f32 %v1393_v51, %v1385_v29  ;;  %v1369_v29 = vld [vmem:[%s1904_s9] ss:$0 sm:$0xff] }
 0x3ef   : > { %v815_v53 = vpack.c.bf16 %v814_v52, %v814_v52 }
 0x3f1   : > { %1238 = vmatmul.msk.bf16.vlgmr.msrb.gmra.mxu1 %vm655_vm5, %v815_v53  ;;  %v1371_v53 = vld [vmem:[%s1908_s13] ss:$0 sm:$0xff] }
 0x44e   : > { %v710_v54 = vpop.f32.mrf.mxu2 }
 0x44f   : > { %714 = vst.msk [vmem:[#allocation2] sm:$0xff] %vm655_vm5, %v710_v54 }
 0x456   : > { %v712_v55 = vpop.f32.mrf.mxu2 }
 0x45e   : > { %v769_v56 = vpop.f32.mrf.mxu2 }
 0x45f   : > { %774 = vrot.lane.b32.xlu1 %v769_v56, %s1547_s23  ;;  %s1277_s23 = sshll.u32 %s1659_s28, 3  ;;  %s564_s28 = scalar_lea.vmem [#allocation8], %s1222_s21 }
 0x460   : > { %s1123_s27 = scalar_lea.hbm %s1911_s16, %s1277_s23  ;;  %s1125_s18 = sshll.u32 %s564_s28, 4  ;;  %s1126_s18 = int_to_ptr.vmem [resolvable:$true] %s1125_s18 }
 0x461   : > { %s1127_s15 = sshll.u32 %s1123_s27, 4  ;;  %s1480_s21 = scalar_lea.hbm %s1911_s16, 16  ;;  %s1128_s15 = int_to_ptr.hbm [resolvable:$true] %s1127_s15 }
 0x466   : > { %v771_v57 = vpop.f32.mrf.mxu2 }
 0x46e   : > { %v833_v58 = vpop.f32.mrf.mxu1  ;;  %v897_v59 = vpop.f32.mrf.mxu2 }
 0x46f   : > { %902 = vrot.lane.b32.xlu0 %v897_v59, %s1548_s24  ;;  %838 = vrot.lane.b32.xlu2 %v833_v58, %s1549_s29  ;;  %s1113_s24 = scalar_lea.sflag [#allocation5], %s1726_s0  ;;  %s1474_s29 = sshra.s32 %s1128_s15, 4  ;;  %s1475_s29 = int_to_ptr.hbm [resolvable:$true] %s1474_s29 }
 0x470   : > { %s1476_s23 = scalar_lea.hbm %s1475_s29, 8  ;;  %p1481_p8 = scmp.lt.s32.totalorder %s1475_s29, %s1911_s16 }
 0x471   : > { %p1477_p1 = scmp.ne.s32.totalorder %s1475_s29, %s1476_s23  ;;  %p1482_p7 = scmp.lt.s32.totalorder %s1480_s21, %s1476_s23 }
 0x473   : > { %p1478_p5 = pnand %p1477_p1, %p1695_p13  ;;  %p1483_p9 = por %p1482_p7, %p1481_p8 }
 0x475   : > { %p1479_p12 = pneg %p1478_p5 }
 0x476   : > { %v835_v60 = vpop.f32.mrf.mxu1  ;;  %v899_v61 = vpop.f32.mrf.mxu2 }
 0x477   : > { %p1484_p10 = pnand %p1483_p9, %p1479_p12 }
 0x4c9   : > { %v839_v1 = vpop.permute.xlu2 %838 }
 0x4d1   : > { %v775_v0 = vpop.permute.xlu1 %774 }
 0x4d2   : > { %778 = vst.msk [vmem:[#allocation2] sm:$0xff] %vm777_vm7, %v775_v0 }
 0x4d3   : > { %842 = vst.msk [vmem:[#allocation2] sm:$0xff] %vm841_vm8, %v839_v1 }
 0x4e1   : > { %v903_v2 = vpop.permute.xlu0 %902 }
 0x4e2   : > { %906 = vst.msk [vmem:[#allocation2] sm:$0xff] %vm905_vm9, %v903_v2 }
 0x4e9   : > { %v907_v3 = vld [vmem:[#allocation2] sm:$0xff] }
 0x4ea   : > { %v912_v4 = vpack.c.bf16 %v907_v3, %v907_v3 }
 0x4ec   : > { %1249 = vmatmul.msk.bf16.vlgmr.msra.gmra.mxu0 %vm573_vm0, %v912_v4 }
 0x569   : > { %v941_v6 = vpop.f32.mrf.mxu0 }
 0x56a   : > { %v942_v7 = vadd.f32 %v1367_v5, %v941_v6 }
 0x56c   : > { %v945_v9 = vadd.f32 %v942_v7, %v1761_v30 }
 0x56e   : > { %v948_v10 = vsel %vm573_vm0, %v945_v9, 0.0 }
 0x56f   : > { %949 = vadd.xlane.f32.xlu2 %v948_v10  ;;  %v1372_v10 = vld [vmem:[%s1909_s14] ss:$0 sm:$0xff] }
 0x571   : > { %v943_v11 = vpop.f32.mrf.mxu0 }
 0x5e2   : > { %v950_v12 = vpop.xlane.xlu2 %949 }
 0x5e3   : > { %v951_v13 = vmul.f32 %v950_v12, %v1744_v8  ;;  %v1373_v12 = vld [vmem:[%s1936_s25] ss:$0 sm:$0xff] }
 0x5e5   : > { %v952_v14 = vsub.f32 %v945_v9, %v951_v13 }
 0x5e7   : > { %v953_v15 = vmul.f32 %v952_v14, %v952_v14 }
 0x5e9   : > { %v954_v16 = vsel %vm573_vm0, %v953_v15, 0.0 }
 0x5ea   : > { %955 = vadd.xlane.f32.xlu0 %v954_v16 }
 0x65d   : > { %v956_v19 = vpop.xlane.xlu0 %955 }
 0x65e   : > { %v957_v20 = vmul.f32 %v956_v19, %v1744_v8 }
 0x660   : > { %v958_v30 = vadd.f32 1e-12, %v957_v20 }
 0x662   : > { %1394 = vrsqrt.f32 %v958_v30  ;;  %vm965_vm11 = vweird.f32 %v958_v30 }
 0x668   : > { %v1395_v21 = vpop.eup %1394 }
 0x669   : > { %v960_v22 = vmul.f32 %v1395_v21, %v958_v30  ;;  %vm966_vm10 = vweird.f32 %v1395_v21 }
 0x66a   : > { %vm967_vm12 = vmor %vm965_vm11, %vm966_vm10 }
 0x66b   : > { %v961_v23 = vmul.f32 %v1395_v21, %v960_v22 }
 0x66d   : > { %v962_v24 = vmul.f32 0.5, %v961_v23 }
 0x66f   : > { %v963_v25 = vsub.f32 1.5, %v962_v24 }
 0x671   : > { %v964_v26 = vmul.f32 %v1395_v21, %v963_v25 }
 0x673   : > { %v968_v28 = vsel %vm967_vm12, %v1395_v21, %v964_v26 }
 0x674   : > { %v969_v31 = vmul.f32 %v968_v28, %v952_v14 }
 0x676   : > { %v973_v32 = vmul.f32 %v1368_v27, %v969_v31 }
 0x678   : > { %v977_v33 = vadd.f32 %v1369_v29, %v973_v32 }
 0x67a   : > { %v982_v34 = vpack.c.bf16 %v977_v33, %v977_v33 }
 0x67c   : > { %1258 = vmatmul.msk.bf16.vlgmr.msra.gmra.mxu1 %vm573_vm0, %v982_v34 }
 0x6f9   : > { %v1011_v40 = vpop.f32.mrf.mxu1 }
 0x6fa   : > { %v1012_v41 = vadd.f32 %v1370_v39, %v1011_v40 }
 0x6fc   : > { %v1016_v42 = vmul.f32 0.044715, %v1012_v41  ;;  %v1015_v49 = vmul.f32 0.5, %v1012_v41 }
 0x6fe   : > { %v1017_v43 = vmul.f32 %v1016_v42, %v1012_v41 }
 0x700   : > { %v1018_v44 = vmul.f32 %v1017_v43, %v1012_v41 }
 0x701   : > { %v1013_v45 = vpop.f32.mrf.mxu1 }
 0x702   : > { %v1019_v46 = vadd.f32 %v1018_v44, %v1012_v41 }
 0x704   : > { %v1020_v47 = vmul.f32 0.7978846, %v1019_v46 }
 0x706   : > { %1396 = vtanh.f32 %v1020_v47 }
 0x70c   : > { %v1397_v48 = vpop.eup %1396 }
 0x70d   : > { %v1022_v50 = vadd.f32 1.0, %v1397_v48 }
 0x70f   : > { %v1023_v51 = vmul.f32 %v1022_v50, %v1015_v49 }
 0x711   : > { %v1032_v52 = vpack.c.bf16 %v1023_v51, %v1023_v51 }
 0x713   : > { %1275 = vmatmul.msk.bf16.vlgmr.msra.gmra.mxu3 %vm1061_vm13, %v1032_v52 }
 0x796   : > { %v1074_v54 = vpop.f32.mrf.mxu3 }
 0x797   : > { %v1075_v55 = vadd.f32 %v1371_v53, %v1074_v54 }
 0x799   : > { %v1078_v56 = vadd.f32 %v1075_v55, %v977_v33 }
 0x79b   : > { %v1081_v57 = vsel %vm573_vm0, %v1078_v56, 0.0 }
 0x79c   : > { %1082 = vadd.xlane.f32.xlu1 %v1081_v57 }
 0x79e   : > { %v1076_v58 = vpop.f32.mrf.mxu3 }
 0x80f   : > { %v1083_v59 = vpop.xlane.xlu1 %1082 }
 0x810   : > { %v1084_v60 = vmul.f32 %v1083_v59, %v1744_v8 }
 0x812   : > { %v1085_v61 = vsub.f32 %v1078_v56, %v1084_v60 }
 0x814   : > { %v1086_v62 = vmul.f32 %v1085_v61, %v1085_v61 }
 0x816   : > { %v1087_v63 = vsel %vm573_vm0, %v1086_v62, 0.0 }
 0x817   : > { %1088 = vadd.xlane.f32.xlu2 %v1087_v63 }
 0x88a   : > { %v1089_v0 = vpop.xlane.xlu2 %1088 }
 0x88b   : > { %v1090_v1 = vmul.f32 %v1089_v0, %v1744_v8 }
 0x88d   : > { %v1091_v2 = vadd.f32 1e-12, %v1090_v1 }
 0x88f   : > { %1398 = vrsqrt.f32 %v1091_v2  ;;  %vm1098_vm15 = vweird.f32 %v1091_v2 }
 0x895   : > { %v1399_v3 = vpop.eup %1398 }
 0x896   : > { %v1093_v4 = vmul.f32 %v1399_v3, %v1091_v2  ;;  %vm1099_vm14 = vweird.f32 %v1399_v3 }
 0x897   : > { %vm1100_vm1 = vmor %vm1098_vm15, %vm1099_vm14 }
 0x898   : > { %v1094_v5 = vmul.f32 %v1399_v3, %v1093_v4 }
 0x89a   : > { %v1095_v6 = vmul.f32 0.5, %v1094_v5 }
 0x89c   : > { %v1096_v7 = vsub.f32 1.5, %v1095_v6 }
 0x89e   : > { %v1097_v9 = vmul.f32 %v1399_v3, %v1096_v7 }
 0x8a0   : > { %v1101_v8 = vsel %vm1100_vm1, %v1399_v3, %v1097_v9 }
 0x8a1   : > { %v1102_v11 = vmul.f32 %v1101_v8, %v1085_v61 }
 0x8a3   : > { %v1106_v13 = vmul.f32 %v1372_v10, %v1102_v11 }
 0x8a5   : > { %v1110_v14 = vadd.f32 %v1373_v12, %v1106_v13 }
 0x8a7   : > { %1111 = vst.msk [vmem:[%s564_s28] sm:$0xff] %vm573_vm0, %v1110_v14 }
 0x8a8   : > { %1487 = shalt.err (!%p1484_p10)
}
 0x8a9   : > { %1296 = dma.vmem_to_hbm [thread:$0]  (%p1695_p13), %s1126_s18, 128, %s1128_s15, %s1113_s24  }
 0x8aa PF: > { %s1937_s0 = sld [smem:[#allocation12_spill]] }
 0x8ab   : > { %s1938_s26 = sld [smem:[#allocation14_spill]] }
 0x8b0   : > { %s1139_s25 = sand.u32 1, %s1937_s0  }
 0x8b1   : > { %p1939_p11 = scmp.ge.s32.totalorder %s1938_s26, 2  ;;  %s1140_s28 = scalar_lea.sflag [#allocation5], %s1139_s25 }
 0x8b3   : > { %p1307_p0 = pnand %p1939_p11, %p1700_p4 }
 0x8b5   : > { %p1308_p2 = pneg %p1307_p0 }
 0x8b7   : > { %1513 = dma.done.wait (%p1308_p2), %s1140_s28, 128  }
 0x8b8   : > { %1515 = vsyncadd (%p1308_p2), %s1140_s28, 4294967168  ;;  %s1940_s24 = sld [smem:[#allocation15_spill]]  ;;  %s1943_s21 = smov %s1522_s22 }
 0x8b9   : > { %s1941_s29 = sld [smem:[#allocation13_spill]] }
 0x8ba   : > { %s1942_s23 = sld [smem:[#allocation16_spill]] }
 0x8be   : > { %p30_p6 = scmp.ge.s32.totalorder %s1940_s24, 4  }
 0x8bf   : > { %s1944_s22 = smov %s1941_s29 }
 0x8c0   :  { %32 = sbr.rel (!%p30_p6) target bundleno = 10 (0xa), region = 136 }
 0x8c5   :  { %1146 = vsyncpa [#allocation4], 1 }
 0x8c6   :  { %1148 = vsyncpa [#allocation4 + $0x1], 1 }
 0x8c7   :  { %1149 = vsyncpa [#allocation7], 1 }
 0x8c8   :  { %1150 = vsyncpa [#allocation5], 1 }
 0x8c9   :  { %1152 = vsyncpa [#allocation5 + $0x1], 1 }

</bundles_post_ra>
